<compile_context>
chip_gen: v7x
topology: tpu7x:2x2x1
jax: 0.10.0
libtpu: 0.0.40
codegen_flags: <defaults>
</compile_context>

<pallas_src>
import math

import jax
import jax.numpy as jnp
from jax import lax
from jax.experimental import pallas as pl
from jax.experimental.pallas import tpu as pltpu

# ----------------------------- small config ---------------------------------
D = 128          # embedding dim (TITAN: 768) -- multiple of 128 lanes
H = 4            # attention heads (TITAN: 12)
HD = D // H      # head dim = 32
F = 256          # MLP hidden dim (TITAN: 4*768)
L = 2            # transformer layers (TITAN: 12)
N = 15           # number of patches in the slide
S = N + 1        # sequence length incl. CLS token = 16 (multiple of 8)
EPS = 1e-5
_SCALE = 1.0 / math.sqrt(HD)

# Packed-vector-slab row indices (per layer), lane width 3*D = 384.
_R_LN1W, _R_LN1B, _R_BQKV, _R_BO, _R_LN2W, _R_LN2B, _R_B1, _R_B2 = range(8)


def _layer_norm(x, w, b):
    mu = jnp.mean(x, axis=-1, keepdims=True)
    var = jnp.mean((x - mu) ** 2, axis=-1, keepdims=True)
    return (x - mu) * lax.rsqrt(var + EPS) * w + b


def titan_kernel(x0_ref, bias_ref, wqkv_ref, wo_ref, w1_ref, w2_ref, vec_ref, out_ref):
    """Single grid step; L layers statically unrolled, residual stream in values."""
    x = x0_ref[...].astype(jnp.float32)                       # (S, D) f32 residual

    for l in range(L):                                        # static unroll (L=2)
        ln1w = vec_ref[l, _R_LN1W:_R_LN1W + 1, 0:D]           # (1, D)
        ln1b = vec_ref[l, _R_LN1B:_R_LN1B + 1, 0:D]
        bqkv = vec_ref[l, _R_BQKV:_R_BQKV + 1, 0:3 * D]       # (1, 3D)
        bo   = vec_ref[l, _R_BO:_R_BO + 1, 0:D]
        ln2w = vec_ref[l, _R_LN2W:_R_LN2W + 1, 0:D]
        ln2b = vec_ref[l, _R_LN2B:_R_LN2B + 1, 0:D]
        b1   = vec_ref[l, _R_B1:_R_B1 + 1, 0:F]               # (1, F)
        b2   = vec_ref[l, _R_B2:_R_B2 + 1, 0:D]

        # ---------------- multi-head self-attention (pre-LN) ------------------
        xn = _layer_norm(x, ln1w, ln1b)
        # Fused QKV: one lane-dense 384-wide matmul, f32 accumulation.
        qkv = jnp.dot(xn.astype(jnp.bfloat16), wqkv_ref[l],
                      preferred_element_type=jnp.float32) + bqkv        # (S, 3D)

        ctx_heads = []
        for h in range(H):                                    # per-head (inherent to MHA)
            qh = (qkv[:, h * HD:(h + 1) * HD] * _SCALE).astype(jnp.bfloat16)   # (S, HD)
            kh = qkv[:, D + h * HD:D + (h + 1) * HD].astype(jnp.bfloat16)
            vh = qkv[:, 2 * D + h * HD:2 * D + (h + 1) * HD].astype(jnp.bfloat16)
            s = jnp.einsum('qd,kd->qk', qh, kh,
                           preferred_element_type=jnp.float32) + bias_ref[h]   # (S, S)
            s = s - jnp.max(s, axis=-1, keepdims=True)        # f32 softmax
            p = jnp.exp(s)
            p = p * pl.reciprocal(jnp.sum(p, axis=-1, keepdims=True), approx=True)
            ctx_heads.append(jnp.dot(p.astype(jnp.bfloat16), vh,
                                     preferred_element_type=jnp.float32))      # (S, HD)
        ctx = jnp.concatenate(ctx_heads, axis=-1)             # (S, D) == concat(heads)
        # Single lane-dense output projection (K=128) instead of 4x K=32 + sum.
        x = x + jnp.dot(ctx.astype(jnp.bfloat16), wo_ref[l],
                        preferred_element_type=jnp.float32) + bo

        # --------------------------- MLP block (pre-LN) -----------------------
        xn = _layer_norm(x, ln2w, ln2b)
        hid = jnp.dot(xn.astype(jnp.bfloat16), w1_ref[l],
                      preferred_element_type=jnp.float32) + b1          # (S, F)
        hid = jax.nn.gelu(hid, approximate=True)              # f32 (VPU/EUP)
        x = x + jnp.dot(hid.astype(jnp.bfloat16), w2_ref[l],
                        preferred_element_type=jnp.float32) + b2

    # ------------------------ final LN + CLS readout -------------------------
    lnfw = vec_ref[L, 0:1, 0:D]
    lnfb = vec_ref[L, 1:2, 0:D]
    xf = _layer_norm(x, lnfw, lnfb)
    # Write an (8,128)-aligned lane-dense slab (unmasked stores); wrapper keeps row 0.
    out_ref[...] = xf[0:8, :].astype(out_ref.dtype)


def init_params(key):
    ks = jax.random.split(key, 8)
    sd = 0.02
    return {
        "cls":   sd * jax.random.normal(ks[0], (1, D), jnp.float32),
        "ln1_w": jnp.ones((L, D), jnp.float32),
        "ln1_b": jnp.zeros((L, D), jnp.float32),
        "wqkv":  sd * jax.random.normal(ks[1], (L, D, 3 * D), jnp.float32),
        "bqkv":  jnp.zeros((L, 3 * D), jnp.float32),
        "wo":    sd * jax.random.normal(ks[2], (L, D, D), jnp.float32),
        "bo":    jnp.zeros((L, D), jnp.float32),
        "ln2_w": jnp.ones((L, D), jnp.float32),
        "ln2_b": jnp.zeros((L, D), jnp.float32),
        "w1":    sd * jax.random.normal(ks[3], (L, D, F), jnp.float32),
        "b1":    jnp.zeros((L, F), jnp.float32),
        "w2":    sd * jax.random.normal(ks[4], (L, F, D), jnp.float32),
        "b2":    jnp.zeros((L, D), jnp.float32),
        "lnf_w": jnp.ones((1, D), jnp.float32),
        "lnf_b": jnp.zeros((1, D), jnp.float32),
    }


def titan_slide_encoder(features, coords, patch_size_level0, params):
    """features: (N, D) f32, coords: (N, 2), patch_size_level0: python scalar.
    Returns the (1, D) slide embedding (TITAN returns (1, 768))."""
    n = features.shape[0]
    assert n == N, "toy config uses a fixed bag size"

    # --- glue: prepend CLS token ---------------------------------------------
    x0 = jnp.concatenate([params["cls"], features.astype(jnp.float32)], axis=0)  # (S, D)

    # --- glue: layer-invariant 2D ALiBi bias, computed once (4 KB) ------------
    g = coords.astype(jnp.float32) / jnp.float32(patch_size_level0)              # (N, 2)
    g = jnp.concatenate([jnp.zeros((1, 2), jnp.float32), g], axis=0)             # (S, 2)
    diff = g[:, None, :] - g[None, :, :]
    dist = jnp.sqrt(jnp.sum(diff * diff, axis=-1))                               # (S, S)
    keep = (jnp.arange(S)[:, None] > 0) & (jnp.arange(S)[None, :] > 0)           # CLS bias = 0
    bias2d = jnp.where(keep, -dist, 0.0)
    slopes = jnp.exp2(-8.0 * jnp.arange(1, H + 1, dtype=jnp.float32) / H)        # 2^(-8(h+1)/H)
    bias = slopes[:, None, None] * bias2d[None, :, :]                            # (H, S, S) f32

    # --- glue: weight layouts (bf16 matmul operands) --------------------------
    wqkv = params["wqkv"].astype(jnp.bfloat16)        # (L, D, 3D): [Q | K | V], head-major
    wo = params["wo"].astype(jnp.bfloat16)            # (L, D, D): rows = concat(heads)
    w1 = params["w1"].astype(jnp.bfloat16)            # (L, D, F)
    w2 = params["w2"].astype(jnp.bfloat16)            # (L, F, D)

    # --- glue: pack all small per-layer vectors (+ final LN) into one slab ----
    vec = jnp.zeros((L + 1, 8, 3 * D), jnp.float32)
    vec = vec.at[:L, _R_LN1W, 0:D].set(params["ln1_w"])
    vec = vec.at[:L, _R_LN1B, 0:D].set(params["ln1_b"])
    vec = vec.at[:L, _R_BQKV, 0:3 * D].set(params["bqkv"])
    vec = vec.at[:L, _R_BO, 0:D].set(params["bo"])
    vec = vec.at[:L, _R_LN2W, 0:D].set(params["ln2_w"])
    vec = vec.at[:L, _R_LN2B, 0:D].set(params["ln2_b"])
    vec = vec.at[:L, _R_B1, 0:F].set(params["b1"])
    vec = vec.at[:L, _R_B2, 0:D].set(params["b2"])
    vec = vec.at[L, 0, 0:D].set(params["lnf_w"][0])
    vec = vec.at[L, 1, 0:D].set(params["lnf_b"][0])

    def rep(shape):                       # whole array resident in VMEM, fetched once
        nd = len(shape)
        return pl.BlockSpec(shape, lambda i, nd=nd: (0,) * nd)

    in_specs = [
        rep(x0.shape),       # (S, D)
        rep(bias.shape),     # (H, S, S)
        rep(wqkv.shape),     # (L, D, 3D)
        rep(wo.shape),       # (L, D, D)
        rep(w1.shape),       # (L, D, F)
        rep(w2.shape),       # (L, F, D)
        rep(vec.shape),      # (L+1, 8, 3D)
    ]

    out = pl.pallas_call(
        titan_kernel,
        out_shape=jax.ShapeDtypeStruct((8, D), jnp.float32),
        grid_spec=pltpu.PrefetchScalarGridSpec(
            num_scalar_prefetch=0,
            grid=(1,),                                    # single step: all weights resident
            in_specs=in_specs,
            out_specs=pl.BlockSpec((8, D), lambda i: (0, 0)),
        ),
        compiler_params=pltpu.CompilerParams(
            dimension_semantics=("arbitrary",)),
    )(x0, bias, wqkv, wo, w1, w2, vec)

    return out[0:1, :]                                    # CLS row = slide embedding


if __name__ == "__main__":
    key = jax.random.PRNGKey(0)
    k_feat, k_coord, k_param = jax.random.split(key, 3)

    # synthetic "batch" matching TitanSlideEncoder.forward's expectations
    features = jax.random.normal(k_feat, (N, D), jnp.float32)            # patch features
    coords = jax.random.randint(k_coord, (N, 2), 0, 4096).astype(jnp.float32)
    patch_size_level0 = 256                                              # scalar attribute

    params = init_params(k_param)

    z = titan_slide_encoder(features, coords, patch_size_level0, params)
    z = jax.block_until_ready(z)
    assert z.shape == (1, D) and bool(jnp.all(jnp.isfinite(z)))
    print("KERNEL_OK")
</pallas_src>

<mosaic_0001>
module attributes {stable_mosaic.version = 11 : i64} {
  func.func @titan_kernel(%arg0: i32, %arg1: memref<16x128xf32, #tpu.memory_space<vmem>>, %arg2: memref<4x16x16xf32, #tpu.memory_space<vmem>>, %arg3: memref<2x128x384xbf16, #tpu.memory_space<vmem>>, %arg4: memref<2x128x128xbf16, #tpu.memory_space<vmem>>, %arg5: memref<2x128x256xbf16, #tpu.memory_space<vmem>>, %arg6: memref<2x256x128xbf16, #tpu.memory_space<vmem>>, %arg7: memref<3x8x384xf32, #tpu.memory_space<vmem>>, %arg8: memref<8x128xf32, #tpu.memory_space<vmem>>) attributes {dimension_semantics = [#tpu.dimension_semantics<arbitrary>], iteration_bounds = array<i64: 1>, scalar_prefetch = 0 : i64, scratch_operands = 0 : i64, tpu.core_type = #tpu.core_type<tc>, window_params = [{pipeline_mode = #tpu.pipeline_mode<synchronous>, transform_indices = @transform_0, window_bounds = array<i64: 16, 128>}, {pipeline_mode = #tpu.pipeline_mode<synchronous>, transform_indices = @transform_1, window_bounds = array<i64: 4, 16, 16>}, {pipeline_mode = #tpu.pipeline_mode<synchronous>, transform_indices = @transform_2, window_bounds = array<i64: 2, 128, 384>}, {pipeline_mode = #tpu.pipeline_mode<synchronous>, transform_indices = @transform_3, window_bounds = array<i64: 2, 128, 128>}, {pipeline_mode = #tpu.pipeline_mode<synchronous>, transform_indices = @transform_4, window_bounds = array<i64: 2, 128, 256>}, {pipeline_mode = #tpu.pipeline_mode<synchronous>, transform_indices = @transform_5, window_bounds = array<i64: 2, 256, 128>}, {pipeline_mode = #tpu.pipeline_mode<synchronous>, transform_indices = @transform_6, window_bounds = array<i64: 3, 8, 384>}, {pipeline_mode = #tpu.pipeline_mode<synchronous>, transform_indices = @transform_7, window_bounds = array<i64: 8, 128>}]} {
    %c0 = arith.constant 0 : index
    %c0_0 = arith.constant 0 : index
    %0 = vector.load %arg1[%c0, %c0_0] : memref<16x128xf32, #tpu.memory_space<vmem>>, vector<16x128xf32>
    %c0_1 = arith.constant 0 : index
    %c0_2 = arith.constant 0 : index
    %c0_3 = arith.constant 0 : index
    %1 = vector.load %arg7[%c0_1, %c0_2, %c0_3] : memref<3x8x384xf32, #tpu.memory_space<vmem>>, vector<1x1x128xf32>
    %2 = vector.shape_cast %1 : vector<1x1x128xf32> to vector<1x128xf32>
    %c0_4 = arith.constant 0 : index
    %c1 = arith.constant 1 : index
    %c0_5 = arith.constant 0 : index
    %3 = vector.load %arg7[%c0_4, %c1, %c0_5] : memref<3x8x384xf32, #tpu.memory_space<vmem>>, vector<1x1x128xf32>
    %4 = vector.shape_cast %3 : vector<1x1x128xf32> to vector<1x128xf32>
    %c0_6 = arith.constant 0 : index
    %c2 = arith.constant 2 : index
    %c0_7 = arith.constant 0 : index
    %5 = vector.load %arg7[%c0_6, %c2, %c0_7] : memref<3x8x384xf32, #tpu.memory_space<vmem>>, vector<1x1x384xf32>
    %6 = vector.shape_cast %5 : vector<1x1x384xf32> to vector<1x384xf32>
    %c0_8 = arith.constant 0 : index
    %c3 = arith.constant 3 : index
    %c0_9 = arith.constant 0 : index
    %7 = vector.load %arg7[%c0_8, %c3, %c0_9] : memref<3x8x384xf32, #tpu.memory_space<vmem>>, vector<1x1x128xf32>
    %8 = vector.shape_cast %7 : vector<1x1x128xf32> to vector<1x128xf32>
    %c0_10 = arith.constant 0 : index
    %c4 = arith.constant 4 : index
    %c0_11 = arith.constant 0 : index
    %9 = vector.load %arg7[%c0_10, %c4, %c0_11] : memref<3x8x384xf32, #tpu.memory_space<vmem>>, vector<1x1x128xf32>
    %10 = vector.shape_cast %9 : vector<1x1x128xf32> to vector<1x128xf32>
    %c0_12 = arith.constant 0 : index
    %c5 = arith.constant 5 : index
    %c0_13 = arith.constant 0 : index
    %11 = vector.load %arg7[%c0_12, %c5, %c0_13] : memref<3x8x384xf32, #tpu.memory_space<vmem>>, vector<1x1x128xf32>
    %12 = vector.shape_cast %11 : vector<1x1x128xf32> to vector<1x128xf32>
    %c0_14 = arith.constant 0 : index
    %c6 = arith.constant 6 : index
    %c0_15 = arith.constant 0 : index
    %13 = vector.load %arg7[%c0_14, %c6, %c0_15] : memref<3x8x384xf32, #tpu.memory_space<vmem>>, vector<1x1x256xf32>
    %14 = vector.shape_cast %13 : vector<1x1x256xf32> to vector<1x256xf32>
    %c0_16 = arith.constant 0 : index
    %c7 = arith.constant 7 : index
    %c0_17 = arith.constant 0 : index
    %15 = vector.load %arg7[%c0_16, %c7, %c0_17] : memref<3x8x384xf32, #tpu.memory_space<vmem>>, vector<1x1x128xf32>
    %16 = vector.shape_cast %15 : vector<1x1x128xf32> to vector<1x128xf32>
    %cst = arith.constant dense<0.000000e+00> : vector<16xf32>
    %17 = vector.multi_reduction <add>, %0, %cst [1] : vector<16x128xf32> to vector<16xf32>
    %18 = vector.shape_cast %17 : vector<16xf32> to vector<16x1xf32>
    %cst_18 = arith.constant 1.280000e+02 : f32
    %19 = vector.broadcast %cst_18 : f32 to vector<16x1xf32>
    %20 = arith.divf %18, %19 : vector<16x1xf32>
    %21 = vector.broadcast %20 : vector<16x1xf32> to vector<16x128xf32>
    %22 = arith.subf %0, %21 : vector<16x128xf32>
    %23 = arith.mulf %22, %22 : vector<16x128xf32>
    %cst_19 = arith.constant dense<0.000000e+00> : vector<16xf32>
    %24 = vector.multi_reduction <add>, %23, %cst_19 [1] : vector<16x128xf32> to vector<16xf32>
    %25 = vector.shape_cast %24 : vector<16xf32> to vector<16x1xf32>
    %cst_20 = arith.constant 1.280000e+02 : f32
    %26 = vector.broadcast %cst_20 : f32 to vector<16x1xf32>
    %27 = arith.divf %25, %26 : vector<16x1xf32>
    %28 = vector.broadcast %20 : vector<16x1xf32> to vector<16x128xf32>
    %29 = arith.subf %0, %28 : vector<16x128xf32>
    %cst_21 = arith.constant 9.99999974E-6 : f32
    %30 = vector.broadcast %cst_21 : f32 to vector<16x1xf32>
    %31 = arith.addf %27, %30 : vector<16x1xf32>
    %32 = math.rsqrt %31 : vector<16x1xf32>
    %33 = vector.broadcast %32 : vector<16x1xf32> to vector<16x128xf32>
    %34 = arith.mulf %29, %33 : vector<16x128xf32>
    %35 = vector.broadcast %2 : vector<1x128xf32> to vector<16x128xf32>
    %36 = arith.mulf %34, %35 : vector<16x128xf32>
    %37 = vector.broadcast %4 : vector<1x128xf32> to vector<16x128xf32>
    %38 = arith.addf %36, %37 : vector<16x128xf32>
    %39 = arith.truncf %38 : vector<16x128xf32> to vector<16x128xbf16>
    %c0_22 = arith.constant 0 : index
    %c0_23 = arith.constant 0 : index
    %c0_24 = arith.constant 0 : index
    %40 = vector.load %arg3[%c0_22, %c0_23, %c0_24] : memref<2x128x384xbf16, #tpu.memory_space<vmem>>, vector<1x128x384xbf16>
    %41 = vector.shape_cast %40 : vector<1x128x384xbf16> to vector<128x384xbf16>
    %cst_25 = arith.constant dense<0.000000e+00> : vector<16x384xf32>
    %42 = tpu.matmul %39, %41, %cst_25 {dimension_numbers = #tpu.dot_dimension_numbers<[1], [0], [0], [1], [0, 0, 1, 1], [], []>} : vector<16x128xbf16>, vector<128x384xbf16>, vector<16x384xf32> -> vector<16x384xf32>
    %43 = vector.broadcast %6 : vector<1x384xf32> to vector<16x384xf32>
    %44 = arith.addf %42, %43 : vector<16x384xf32>
    %45 = vector.extract_strided_slice %44 {offsets = [0, 0], sizes = [16, 32], strides = [1, 1]} : vector<16x384xf32> to vector<16x32xf32>
    %cst_26 = arith.constant 0.176776692 : f32
    %46 = vector.broadcast %cst_26 : f32 to vector<16x32xf32>
    %47 = arith.mulf %45, %46 : vector<16x32xf32>
    %48 = arith.truncf %47 : vector<16x32xf32> to vector<16x32xbf16>
    %49 = vector.extract_strided_slice %44 {offsets = [0, 128], sizes = [16, 32], strides = [1, 1]} : vector<16x384xf32> to vector<16x32xf32>
    %50 = arith.truncf %49 : vector<16x32xf32> to vector<16x32xbf16>
    %51 = vector.extract_strided_slice %44 {offsets = [0, 256], sizes = [16, 32], strides = [1, 1]} : vector<16x384xf32> to vector<16x32xf32>
    %52 = arith.truncf %51 : vector<16x32xf32> to vector<16x32xbf16>
    "tpu.trace_start"() <{level = 10 : i32, message = "qd,kd->qk"}> : () -> ()
    %cst_27 = arith.constant dense<0.000000e+00> : vector<16x16xf32>
    %53 = tpu.matmul %48, %50, %cst_27 {dimension_numbers = #tpu.dot_dimension_numbers<[1], [1], [0], [0], [0, 0, 1, 0], [], []>} : vector<16x32xbf16>, vector<16x32xbf16>, vector<16x16xf32> -> vector<16x16xf32>
    "tpu.trace_stop"() : () -> ()
    %c0_28 = arith.constant 0 : index
    %c0_29 = arith.constant 0 : index
    %c0_30 = arith.constant 0 : index
    %54 = vector.load %arg2[%c0_28, %c0_29, %c0_30] : memref<4x16x16xf32, #tpu.memory_space<vmem>>, vector<1x16x16xf32>
    %55 = vector.shape_cast %54 : vector<1x16x16xf32> to vector<16x16xf32>
    %56 = arith.addf %53, %55 : vector<16x16xf32>
    %cst_31 = arith.constant dense<0xFF800000> : vector<16xf32>
    %57 = vector.multi_reduction <maximumf>, %56, %cst_31 [1] : vector<16x16xf32> to vector<16xf32>
    %58 = vector.shape_cast %57 : vector<16xf32> to vector<16x1xf32>
    %59 = vector.broadcast %58 : vector<16x1xf32> to vector<16x16xf32>
    %60 = arith.subf %56, %59 : vector<16x16xf32>
    %61 = math.exp %60 : vector<16x16xf32>
    %cst_32 = arith.constant dense<0.000000e+00> : vector<16xf32>
    %62 = vector.multi_reduction <add>, %61, %cst_32 [1] : vector<16x16xf32> to vector<16xf32>
    %63 = vector.shape_cast %62 : vector<16xf32> to vector<16x1xf32>
    %64 = tpu.reciprocal %63 {approx = true} : vector<16x1xf32> -> vector<16x1xf32>
    %65 = vector.broadcast %64 : vector<16x1xf32> to vector<16x16xf32>
    %66 = arith.mulf %61, %65 : vector<16x16xf32>
    %67 = arith.truncf %66 : vector<16x16xf32> to vector<16x16xbf16>
    %cst_33 = arith.constant dense<0.000000e+00> : vector<16x32xf32>
    %68 = tpu.matmul %67, %52, %cst_33 {dimension_numbers = #tpu.dot_dimension_numbers<[1], [0], [0], [1], [0, 0, 1, 1], [], []>} : vector<16x16xbf16>, vector<16x32xbf16>, vector<16x32xf32> -> vector<16x32xf32>
    %69 = vector.extract_strided_slice %44 {offsets = [0, 32], sizes = [16, 32], strides = [1, 1]} : vector<16x384xf32> to vector<16x32xf32>
    %cst_34 = arith.constant 0.176776692 : f32
    %70 = vector.broadcast %cst_34 : f32 to vector<16x32xf32>
    %71 = arith.mulf %69, %70 : vector<16x32xf32>
    %72 = arith.truncf %71 : vector<16x32xf32> to vector<16x32xbf16>
    %73 = vector.extract_strided_slice %44 {offsets = [0, 160], sizes = [16, 32], strides = [1, 1]} : vector<16x384xf32> to vector<16x32xf32>
    %74 = arith.truncf %73 : vector<16x32xf32> to vector<16x32xbf16>
    %75 = vector.extract_strided_slice %44 {offsets = [0, 288], sizes = [16, 32], strides = [1, 1]} : vector<16x384xf32> to vector<16x32xf32>
    %76 = arith.truncf %75 : vector<16x32xf32> to vector<16x32xbf16>
    "tpu.trace_start"() <{level = 10 : i32, message = "qd,kd->qk"}> : () -> ()
    %cst_35 = arith.constant dense<0.000000e+00> : vector<16x16xf32>
    %77 = tpu.matmul %72, %74, %cst_35 {dimension_numbers = #tpu.dot_dimension_numbers<[1], [1], [0], [0], [0, 0, 1, 0], [], []>} : vector<16x32xbf16>, vector<16x32xbf16>, vector<16x16xf32> -> vector<16x16xf32>
    "tpu.trace_stop"() : () -> ()
    %c1_36 = arith.constant 1 : index
    %c0_37 = arith.constant 0 : index
    %c0_38 = arith.constant 0 : index
    %78 = vector.load %arg2[%c1_36, %c0_37, %c0_38] : memref<4x16x16xf32, #tpu.memory_space<vmem>>, vector<1x16x16xf32>
    %79 = vector.shape_cast %78 : vector<1x16x16xf32> to vector<16x16xf32>
    %80 = arith.addf %77, %79 : vector<16x16xf32>
    %cst_39 = arith.constant dense<0xFF800000> : vector<16xf32>
    %81 = vector.multi_reduction <maximumf>, %80, %cst_39 [1] : vector<16x16xf32> to vector<16xf32>
    %82 = vector.shape_cast %81 : vector<16xf32> to vector<16x1xf32>
    %83 = vector.broadcast %82 : vector<16x1xf32> to vector<16x16xf32>
    %84 = arith.subf %80, %83 : vector<16x16xf32>
    %85 = math.exp %84 : vector<16x16xf32>
    %cst_40 = arith.constant dense<0.000000e+00> : vector<16xf32>
    %86 = vector.multi_reduction <add>, %85, %cst_40 [1] : vector<16x16xf32> to vector<16xf32>
    %87 = vector.shape_cast %86 : vector<16xf32> to vector<16x1xf32>
    %88 = tpu.reciprocal %87 {approx = true} : vector<16x1xf32> -> vector<16x1xf32>
    %89 = vector.broadcast %88 : vector<16x1xf32> to vector<16x16xf32>
    %90 = arith.mulf %85, %89 : vector<16x16xf32>
    %91 = arith.truncf %90 : vector<16x16xf32> to vector<16x16xbf16>
    %cst_41 = arith.constant dense<0.000000e+00> : vector<16x32xf32>
    %92 = tpu.matmul %91, %76, %cst_41 {dimension_numbers = #tpu.dot_dimension_numbers<[1], [0], [0], [1], [0, 0, 1, 1], [], []>} : vector<16x16xbf16>, vector<16x32xbf16>, vector<16x32xf32> -> vector<16x32xf32>
    %93 = vector.extract_strided_slice %44 {offsets = [0, 64], sizes = [16, 32], strides = [1, 1]} : vector<16x384xf32> to vector<16x32xf32>
    %cst_42 = arith.constant 0.176776692 : f32
    %94 = vector.broadcast %cst_42 : f32 to vector<16x32xf32>
    %95 = arith.mulf %93, %94 : vector<16x32xf32>
    %96 = arith.truncf %95 : vector<16x32xf32> to vector<16x32xbf16>
    %97 = vector.extract_strided_slice %44 {offsets = [0, 192], sizes = [16, 32], strides = [1, 1]} : vector<16x384xf32> to vector<16x32xf32>
    %98 = arith.truncf %97 : vector<16x32xf32> to vector<16x32xbf16>
    %99 = vector.extract_strided_slice %44 {offsets = [0, 320], sizes = [16, 32], strides = [1, 1]} : vector<16x384xf32> to vector<16x32xf32>
    %100 = arith.truncf %99 : vector<16x32xf32> to vector<16x32xbf16>
    "tpu.trace_start"() <{level = 10 : i32, message = "qd,kd->qk"}> : () -> ()
    %cst_43 = arith.constant dense<0.000000e+00> : vector<16x16xf32>
    %101 = tpu.matmul %96, %98, %cst_43 {dimension_numbers = #tpu.dot_dimension_numbers<[1], [1], [0], [0], [0, 0, 1, 0], [], []>} : vector<16x32xbf16>, vector<16x32xbf16>, vector<16x16xf32> -> vector<16x16xf32>
    "tpu.trace_stop"() : () -> ()
    %c2_44 = arith.constant 2 : index
    %c0_45 = arith.constant 0 : index
    %c0_46 = arith.constant 0 : index
    %102 = vector.load %arg2[%c2_44, %c0_45, %c0_46] : memref<4x16x16xf32, #tpu.memory_space<vmem>>, vector<1x16x16xf32>
    %103 = vector.shape_cast %102 : vector<1x16x16xf32> to vector<16x16xf32>
    %104 = arith.addf %101, %103 : vector<16x16xf32>
    %cst_47 = arith.constant dense<0xFF800000> : vector<16xf32>
    %105 = vector.multi_reduction <maximumf>, %104, %cst_47 [1] : vector<16x16xf32> to vector<16xf32>
    %106 = vector.shape_cast %105 : vector<16xf32> to vector<16x1xf32>
    %107 = vector.broadcast %106 : vector<16x1xf32> to vector<16x16xf32>
    %108 = arith.subf %104, %107 : vector<16x16xf32>
    %109 = math.exp %108 : vector<16x16xf32>
    %cst_48 = arith.constant dense<0.000000e+00> : vector<16xf32>
    %110 = vector.multi_reduction <add>, %109, %cst_48 [1] : vector<16x16xf32> to vector<16xf32>
    %111 = vector.shape_cast %110 : vector<16xf32> to vector<16x1xf32>
    %112 = tpu.reciprocal %111 {approx = true} : vector<16x1xf32> -> vector<16x1xf32>
    %113 = vector.broadcast %112 : vector<16x1xf32> to vector<16x16xf32>
    %114 = arith.mulf %109, %113 : vector<16x16xf32>
    %115 = arith.truncf %114 : vector<16x16xf32> to vector<16x16xbf16>
    %cst_49 = arith.constant dense<0.000000e+00> : vector<16x32xf32>
    %116 = tpu.matmul %115, %100, %cst_49 {dimension_numbers = #tpu.dot_dimension_numbers<[1], [0], [0], [1], [0, 0, 1, 1], [], []>} : vector<16x16xbf16>, vector<16x32xbf16>, vector<16x32xf32> -> vector<16x32xf32>
    %117 = vector.extract_strided_slice %44 {offsets = [0, 96], sizes = [16, 32], strides = [1, 1]} : vector<16x384xf32> to vector<16x32xf32>
    %cst_50 = arith.constant 0.176776692 : f32
    %118 = vector.broadcast %cst_50 : f32 to vector<16x32xf32>
    %119 = arith.mulf %117, %118 : vector<16x32xf32>
    %120 = arith.truncf %119 : vector<16x32xf32> to vector<16x32xbf16>
    %121 = vector.extract_strided_slice %44 {offsets = [0, 224], sizes = [16, 32], strides = [1, 1]} : vector<16x384xf32> to vector<16x32xf32>
    %122 = arith.truncf %121 : vector<16x32xf32> to vector<16x32xbf16>
    %123 = vector.extract_strided_slice %44 {offsets = [0, 352], sizes = [16, 32], strides = [1, 1]} : vector<16x384xf32> to vector<16x32xf32>
    %124 = arith.truncf %123 : vector<16x32xf32> to vector<16x32xbf16>
    "tpu.trace_start"() <{level = 10 : i32, message = "qd,kd->qk"}> : () -> ()
    %cst_51 = arith.constant dense<0.000000e+00> : vector<16x16xf32>
    %125 = tpu.matmul %120, %122, %cst_51 {dimension_numbers = #tpu.dot_dimension_numbers<[1], [1], [0], [0], [0, 0, 1, 0], [], []>} : vector<16x32xbf16>, vector<16x32xbf16>, vector<16x16xf32> -> vector<16x16xf32>
    "tpu.trace_stop"() : () -> ()
    %c3_52 = arith.constant 3 : index
    %c0_53 = arith.constant 0 : index
    %c0_54 = arith.constant 0 : index
    %126 = vector.load %arg2[%c3_52, %c0_53, %c0_54] : memref<4x16x16xf32, #tpu.memory_space<vmem>>, vector<1x16x16xf32>
    %127 = vector.shape_cast %126 : vector<1x16x16xf32> to vector<16x16xf32>
    %128 = arith.addf %125, %127 : vector<16x16xf32>
    %cst_55 = arith.constant dense<0xFF800000> : vector<16xf32>
    %129 = vector.multi_reduction <maximumf>, %128, %cst_55 [1] : vector<16x16xf32> to vector<16xf32>
    %130 = vector.shape_cast %129 : vector<16xf32> to vector<16x1xf32>
    %131 = vector.broadcast %130 : vector<16x1xf32> to vector<16x16xf32>
    %132 = arith.subf %128, %131 : vector<16x16xf32>
    %133 = math.exp %132 : vector<16x16xf32>
    %cst_56 = arith.constant dense<0.000000e+00> : vector<16xf32>
    %134 = vector.multi_reduction <add>, %133, %cst_56 [1] : vector<16x16xf32> to vector<16xf32>
    %135 = vector.shape_cast %134 : vector<16xf32> to vector<16x1xf32>
    %136 = tpu.reciprocal %135 {approx = true} : vector<16x1xf32> -> vector<16x1xf32>
    %137 = vector.broadcast %136 : vector<16x1xf32> to vector<16x16xf32>
    %138 = arith.mulf %133, %137 : vector<16x16xf32>
    %139 = arith.truncf %138 : vector<16x16xf32> to vector<16x16xbf16>
    %cst_57 = arith.constant dense<0.000000e+00> : vector<16x32xf32>
    %140 = tpu.matmul %139, %124, %cst_57 {dimension_numbers = #tpu.dot_dimension_numbers<[1], [0], [0], [1], [0, 0, 1, 1], [], []>} : vector<16x16xbf16>, vector<16x32xbf16>, vector<16x32xf32> -> vector<16x32xf32>
    %141 = tpu.concatenate %68, %92, %116, %140 in 1 : vector<16x32xf32>, vector<16x32xf32>, vector<16x32xf32>, vector<16x32xf32> -> vector<16x128xf32>
    %142 = arith.truncf %141 : vector<16x128xf32> to vector<16x128xbf16>
    %c0_58 = arith.constant 0 : index
    %c0_59 = arith.constant 0 : index
    %c0_60 = arith.constant 0 : index
    %143 = vector.load %arg4[%c0_58, %c0_59, %c0_60] : memref<2x128x128xbf16, #tpu.memory_space<vmem>>, vector<1x128x128xbf16>
    %144 = vector.shape_cast %143 : vector<1x128x128xbf16> to vector<128x128xbf16>
    %cst_61 = arith.constant dense<0.000000e+00> : vector<16x128xf32>
    %145 = tpu.matmul %142, %144, %cst_61 {dimension_numbers = #tpu.dot_dimension_numbers<[1], [0], [0], [1], [0, 0, 1, 1], [], []>} : vector<16x128xbf16>, vector<128x128xbf16>, vector<16x128xf32> -> vector<16x128xf32>
    %146 = arith.addf %0, %145 : vector<16x128xf32>
    %147 = vector.broadcast %8 : vector<1x128xf32> to vector<16x128xf32>
    %148 = arith.addf %146, %147 : vector<16x128xf32>
    %cst_62 = arith.constant dense<0.000000e+00> : vector<16xf32>
    %149 = vector.multi_reduction <add>, %148, %cst_62 [1] : vector<16x128xf32> to vector<16xf32>
    %150 = vector.shape_cast %149 : vector<16xf32> to vector<16x1xf32>
    %cst_63 = arith.constant 1.280000e+02 : f32
    %151 = vector.broadcast %cst_63 : f32 to vector<16x1xf32>
    %152 = arith.divf %150, %151 : vector<16x1xf32>
    %153 = vector.broadcast %152 : vector<16x1xf32> to vector<16x128xf32>
    %154 = arith.subf %148, %153 : vector<16x128xf32>
    %155 = arith.mulf %154, %154 : vector<16x128xf32>
    %cst_64 = arith.constant dense<0.000000e+00> : vector<16xf32>
    %156 = vector.multi_reduction <add>, %155, %cst_64 [1] : vector<16x128xf32> to vector<16xf32>
    %157 = vector.shape_cast %156 : vector<16xf32> to vector<16x1xf32>
    %cst_65 = arith.constant 1.280000e+02 : f32
    %158 = vector.broadcast %cst_65 : f32 to vector<16x1xf32>
    %159 = arith.divf %157, %158 : vector<16x1xf32>
    %160 = vector.broadcast %152 : vector<16x1xf32> to vector<16x128xf32>
    %161 = arith.subf %148, %160 : vector<16x128xf32>
    %cst_66 = arith.constant 9.99999974E-6 : f32
    %162 = vector.broadcast %cst_66 : f32 to vector<16x1xf32>
    %163 = arith.addf %159, %162 : vector<16x1xf32>
    %164 = math.rsqrt %163 : vector<16x1xf32>
    %165 = vector.broadcast %164 : vector<16x1xf32> to vector<16x128xf32>
    %166 = arith.mulf %161, %165 : vector<16x128xf32>
    %167 = vector.broadcast %10 : vector<1x128xf32> to vector<16x128xf32>
    %168 = arith.mulf %166, %167 : vector<16x128xf32>
    %169 = vector.broadcast %12 : vector<1x128xf32> to vector<16x128xf32>
    %170 = arith.addf %168, %169 : vector<16x128xf32>
    %171 = arith.truncf %170 : vector<16x128xf32> to vector<16x128xbf16>
    %c0_67 = arith.constant 0 : index
    %c0_68 = arith.constant 0 : index
    %c0_69 = arith.constant 0 : index
    %172 = vector.load %arg5[%c0_67, %c0_68, %c0_69] : memref<2x128x256xbf16, #tpu.memory_space<vmem>>, vector<1x128x256xbf16>
    %173 = vector.shape_cast %172 : vector<1x128x256xbf16> to vector<128x256xbf16>
    %cst_70 = arith.constant dense<0.000000e+00> : vector<16x256xf32>
    %174 = tpu.matmul %171, %173, %cst_70 {dimension_numbers = #tpu.dot_dimension_numbers<[1], [0], [0], [1], [0, 0, 1, 1], [], []>} : vector<16x128xbf16>, vector<128x256xbf16>, vector<16x256xf32> -> vector<16x256xf32>
    %175 = vector.broadcast %14 : vector<1x256xf32> to vector<16x256xf32>
    %176 = arith.addf %174, %175 : vector<16x256xf32>
    %177 = arith.mulf %176, %176 : vector<16x256xf32>
    %178 = arith.mulf %176, %177 : vector<16x256xf32>
    %cst_71 = arith.constant 4.471500e-02 : f32
    %179 = vector.broadcast %cst_71 : f32 to vector<16x256xf32>
    %180 = arith.mulf %179, %178 : vector<16x256xf32>
    %181 = arith.addf %176, %180 : vector<16x256xf32>
    %cst_72 = arith.constant 0.797884583 : f32
    %182 = vector.broadcast %cst_72 : f32 to vector<16x256xf32>
    %183 = arith.mulf %182, %181 : vector<16x256xf32>
    %184 = math.tanh %183 : vector<16x256xf32>
    %cst_73 = arith.constant 1.000000e+00 : f32
    %185 = vector.broadcast %cst_73 : f32 to vector<16x256xf32>
    %186 = arith.addf %185, %184 : vector<16x256xf32>
    %cst_74 = arith.constant 5.000000e-01 : f32
    %187 = vector.broadcast %cst_74 : f32 to vector<16x256xf32>
    %188 = arith.mulf %187, %186 : vector<16x256xf32>
    %189 = arith.mulf %176, %188 : vector<16x256xf32>
    %190 = arith.truncf %189 : vector<16x256xf32> to vector<16x256xbf16>
    %c0_75 = arith.constant 0 : index
    %c0_76 = arith.constant 0 : index
    %c0_77 = arith.constant 0 : index
    %191 = vector.load %arg6[%c0_75, %c0_76, %c0_77] : memref<2x256x128xbf16, #tpu.memory_space<vmem>>, vector<1x256x128xbf16>
    %192 = vector.shape_cast %191 : vector<1x256x128xbf16> to vector<256x128xbf16>
    %cst_78 = arith.constant dense<0.000000e+00> : vector<16x128xf32>
    %193 = tpu.matmul %190, %192, %cst_78 {dimension_numbers = #tpu.dot_dimension_numbers<[1], [0], [0], [1], [0, 0, 1, 1], [], []>} : vector<16x256xbf16>, vector<256x128xbf16>, vector<16x128xf32> -> vector<16x128xf32>
    %194 = arith.addf %148, %193 : vector<16x128xf32>
    %195 = vector.broadcast %16 : vector<1x128xf32> to vector<16x128xf32>
    %196 = arith.addf %194, %195 : vector<16x128xf32>
    %c1_79 = arith.constant 1 : index
    %c0_80 = arith.constant 0 : index
    %c0_81 = arith.constant 0 : index
    %197 = vector.load %arg7[%c1_79, %c0_80, %c0_81] : memref<3x8x384xf32, #tpu.memory_space<vmem>>, vector<1x1x128xf32>
    %198 = vector.shape_cast %197 : vector<1x1x128xf32> to vector<1x128xf32>
    %c1_82 = arith.constant 1 : index
    %c1_83 = arith.constant 1 : index
    %c0_84 = arith.constant 0 : index
    %199 = vector.load %arg7[%c1_82, %c1_83, %c0_84] : memref<3x8x384xf32, #tpu.memory_space<vmem>>, vector<1x1x128xf32>
    %200 = vector.shape_cast %199 : vector<1x1x128xf32> to vector<1x128xf32>
    %c1_85 = arith.constant 1 : index
    %c2_86 = arith.constant 2 : index
    %c0_87 = arith.constant 0 : index
    %201 = vector.load %arg7[%c1_85, %c2_86, %c0_87] : memref<3x8x384xf32, #tpu.memory_space<vmem>>, vector<1x1x384xf32>
    %202 = vector.shape_cast %201 : vector<1x1x384xf32> to vector<1x384xf32>
    %c1_88 = arith.constant 1 : index
    %c3_89 = arith.constant 3 : index
    %c0_90 = arith.constant 0 : index
    %203 = vector.load %arg7[%c1_88, %c3_89, %c0_90] : memref<3x8x384xf32, #tpu.memory_space<vmem>>, vector<1x1x128xf32>
    %204 = vector.shape_cast %203 : vector<1x1x128xf32> to vector<1x128xf32>
    %c1_91 = arith.constant 1 : index
    %c4_92 = arith.constant 4 : index
    %c0_93 = arith.constant 0 : index
    %205 = vector.load %arg7[%c1_91, %c4_92, %c0_93] : memref<3x8x384xf32, #tpu.memory_space<vmem>>, vector<1x1x128xf32>
    %206 = vector.shape_cast %205 : vector<1x1x128xf32> to vector<1x128xf32>
    %c1_94 = arith.constant 1 : index
    %c5_95 = arith.constant 5 : index
    %c0_96 = arith.constant 0 : index
    %207 = vector.load %arg7[%c1_94, %c5_95, %c0_96] : memref<3x8x384xf32, #tpu.memory_space<vmem>>, vector<1x1x128xf32>
    %208 = vector.shape_cast %207 : vector<1x1x128xf32> to vector<1x128xf32>
    %c1_97 = arith.constant 1 : index
    %c6_98 = arith.constant 6 : index
    %c0_99 = arith.constant 0 : index
    %209 = vector.load %arg7[%c1_97, %c6_98, %c0_99] : memref<3x8x384xf32, #tpu.memory_space<vmem>>, vector<1x1x256xf32>
    %210 = vector.shape_cast %209 : vector<1x1x256xf32> to vector<1x256xf32>
    %c1_100 = arith.constant 1 : index
    %c7_101 = arith.constant 7 : index
    %c0_102 = arith.constant 0 : index
    %211 = vector.load %arg7[%c1_100, %c7_101, %c0_102] : memref<3x8x384xf32, #tpu.memory_space<vmem>>, vector<1x1x128xf32>
    %212 = vector.shape_cast %211 : vector<1x1x128xf32> to vector<1x128xf32>
    %cst_103 = arith.constant dense<0.000000e+00> : vector<16xf32>
    %213 = vector.multi_reduction <add>, %196, %cst_103 [1] : vector<16x128xf32> to vector<16xf32>
    %214 = vector.shape_cast %213 : vector<16xf32> to vector<16x1xf32>
    %cst_104 = arith.constant 1.280000e+02 : f32
    %215 = vector.broadcast %cst_104 : f32 to vector<16x1xf32>
    %216 = arith.divf %214, %215 : vector<16x1xf32>
    %217 = vector.broadcast %216 : vector<16x1xf32> to vector<16x128xf32>
    %218 = arith.subf %196, %217 : vector<16x128xf32>
    %219 = arith.mulf %218, %218 : vector<16x128xf32>
    %cst_105 = arith.constant dense<0.000000e+00> : vector<16xf32>
    %220 = vector.multi_reduction <add>, %219, %cst_105 [1] : vector<16x128xf32> to vector<16xf32>
    %221 = vector.shape_cast %220 : vector<16xf32> to vector<16x1xf32>
    %cst_106 = arith.constant 1.280000e+02 : f32
    %222 = vector.broadcast %cst_106 : f32 to vector<16x1xf32>
    %223 = arith.divf %221, %222 : vector<16x1xf32>
    %224 = vector.broadcast %216 : vector<16x1xf32> to vector<16x128xf32>
    %225 = arith.subf %196, %224 : vector<16x128xf32>
    %cst_107 = arith.constant 9.99999974E-6 : f32
    %226 = vector.broadcast %cst_107 : f32 to vector<16x1xf32>
    %227 = arith.addf %223, %226 : vector<16x1xf32>
    %228 = math.rsqrt %227 : vector<16x1xf32>
    %229 = vector.broadcast %228 : vector<16x1xf32> to vector<16x128xf32>
    %230 = arith.mulf %225, %229 : vector<16x128xf32>
    %231 = vector.broadcast %198 : vector<1x128xf32> to vector<16x128xf32>
    %232 = arith.mulf %230, %231 : vector<16x128xf32>
    %233 = vector.broadcast %200 : vector<1x128xf32> to vector<16x128xf32>
    %234 = arith.addf %232, %233 : vector<16x128xf32>
    %235 = arith.truncf %234 : vector<16x128xf32> to vector<16x128xbf16>
    %c1_108 = arith.constant 1 : index
    %c0_109 = arith.constant 0 : index
    %c0_110 = arith.constant 0 : index
    %236 = vector.load %arg3[%c1_108, %c0_109, %c0_110] : memref<2x128x384xbf16, #tpu.memory_space<vmem>>, vector<1x128x384xbf16>
    %237 = vector.shape_cast %236 : vector<1x128x384xbf16> to vector<128x384xbf16>
    %cst_111 = arith.constant dense<0.000000e+00> : vector<16x384xf32>
    %238 = tpu.matmul %235, %237, %cst_111 {dimension_numbers = #tpu.dot_dimension_numbers<[1], [0], [0], [1], [0, 0, 1, 1], [], []>} : vector<16x128xbf16>, vector<128x384xbf16>, vector<16x384xf32> -> vector<16x384xf32>
    %239 = vector.broadcast %202 : vector<1x384xf32> to vector<16x384xf32>
    %240 = arith.addf %238, %239 : vector<16x384xf32>
    %241 = vector.extract_strided_slice %240 {offsets = [0, 0], sizes = [16, 32], strides = [1, 1]} : vector<16x384xf32> to vector<16x32xf32>
    %cst_112 = arith.constant 0.176776692 : f32
    %242 = vector.broadcast %cst_112 : f32 to vector<16x32xf32>
    %243 = arith.mulf %241, %242 : vector<16x32xf32>
    %244 = arith.truncf %243 : vector<16x32xf32> to vector<16x32xbf16>
    %245 = vector.extract_strided_slice %240 {offsets = [0, 128], sizes = [16, 32], strides = [1, 1]} : vector<16x384xf32> to vector<16x32xf32>
    %246 = arith.truncf %245 : vector<16x32xf32> to vector<16x32xbf16>
    %247 = vector.extract_strided_slice %240 {offsets = [0, 256], sizes = [16, 32], strides = [1, 1]} : vector<16x384xf32> to vector<16x32xf32>
    %248 = arith.truncf %247 : vector<16x32xf32> to vector<16x32xbf16>
    "tpu.trace_start"() <{level = 10 : i32, message = "qd,kd->qk"}> : () -> ()
    %cst_113 = arith.constant dense<0.000000e+00> : vector<16x16xf32>
    %249 = tpu.matmul %244, %246, %cst_113 {dimension_numbers = #tpu.dot_dimension_numbers<[1], [1], [0], [0], [0, 0, 1, 0], [], []>} : vector<16x32xbf16>, vector<16x32xbf16>, vector<16x16xf32> -> vector<16x16xf32>
    "tpu.trace_stop"() : () -> ()
    %c0_114 = arith.constant 0 : index
    %c0_115 = arith.constant 0 : index
    %c0_116 = arith.constant 0 : index
    %250 = vector.load %arg2[%c0_114, %c0_115, %c0_116] : memref<4x16x16xf32, #tpu.memory_space<vmem>>, vector<1x16x16xf32>
    %251 = vector.shape_cast %250 : vector<1x16x16xf32> to vector<16x16xf32>
    %252 = arith.addf %249, %251 : vector<16x16xf32>
    %cst_117 = arith.constant dense<0xFF800000> : vector<16xf32>
    %253 = vector.multi_reduction <maximumf>, %252, %cst_117 [1] : vector<16x16xf32> to vector<16xf32>
    %254 = vector.shape_cast %253 : vector<16xf32> to vector<16x1xf32>
    %255 = vector.broadcast %254 : vector<16x1xf32> to vector<16x16xf32>
    %256 = arith.subf %252, %255 : vector<16x16xf32>
    %257 = math.exp %256 : vector<16x16xf32>
    %cst_118 = arith.constant dense<0.000000e+00> : vector<16xf32>
    %258 = vector.multi_reduction <add>, %257, %cst_118 [1] : vector<16x16xf32> to vector<16xf32>
    %259 = vector.shape_cast %258 : vector<16xf32> to vector<16x1xf32>
    %260 = tpu.reciprocal %259 {approx = true} : vector<16x1xf32> -> vector<16x1xf32>
    %261 = vector.broadcast %260 : vector<16x1xf32> to vector<16x16xf32>
    %262 = arith.mulf %257, %261 : vector<16x16xf32>
    %263 = arith.truncf %262 : vector<16x16xf32> to vector<16x16xbf16>
    %cst_119 = arith.constant dense<0.000000e+00> : vector<16x32xf32>
    %264 = tpu.matmul %263, %248, %cst_119 {dimension_numbers = #tpu.dot_dimension_numbers<[1], [0], [0], [1], [0, 0, 1, 1], [], []>} : vector<16x16xbf16>, vector<16x32xbf16>, vector<16x32xf32> -> vector<16x32xf32>
    %265 = vector.extract_strided_slice %240 {offsets = [0, 32], sizes = [16, 32], strides = [1, 1]} : vector<16x384xf32> to vector<16x32xf32>
    %cst_120 = arith.constant 0.176776692 : f32
    %266 = vector.broadcast %cst_120 : f32 to vector<16x32xf32>
    %267 = arith.mulf %265, %266 : vector<16x32xf32>
    %268 = arith.truncf %267 : vector<16x32xf32> to vector<16x32xbf16>
    %269 = vector.extract_strided_slice %240 {offsets = [0, 160], sizes = [16, 32], strides = [1, 1]} : vector<16x384xf32> to vector<16x32xf32>
    %270 = arith.truncf %269 : vector<16x32xf32> to vector<16x32xbf16>
    %271 = vector.extract_strided_slice %240 {offsets = [0, 288], sizes = [16, 32], strides = [1, 1]} : vector<16x384xf32> to vector<16x32xf32>
    %272 = arith.truncf %271 : vector<16x32xf32> to vector<16x32xbf16>
    "tpu.trace_start"() <{level = 10 : i32, message = "qd,kd->qk"}> : () -> ()
    %cst_121 = arith.constant dense<0.000000e+00> : vector<16x16xf32>
    %273 = tpu.matmul %268, %270, %cst_121 {dimension_numbers = #tpu.dot_dimension_numbers<[1], [1], [0], [0], [0, 0, 1, 0], [], []>} : vector<16x32xbf16>, vector<16x32xbf16>, vector<16x16xf32> -> vector<16x16xf32>
    "tpu.trace_stop"() : () -> ()
    %c1_122 = arith.constant 1 : index
    %c0_123 = arith.constant 0 : index
    %c0_124 = arith.constant 0 : index
    %274 = vector.load %arg2[%c1_122, %c0_123, %c0_124] : memref<4x16x16xf32, #tpu.memory_space<vmem>>, vector<1x16x16xf32>
    %275 = vector.shape_cast %274 : vector<1x16x16xf32> to vector<16x16xf32>
    %276 = arith.addf %273, %275 : vector<16x16xf32>
    %cst_125 = arith.constant dense<0xFF800000> : vector<16xf32>
    %277 = vector.multi_reduction <maximumf>, %276, %cst_125 [1] : vector<16x16xf32> to vector<16xf32>
    %278 = vector.shape_cast %277 : vector<16xf32> to vector<16x1xf32>
    %279 = vector.broadcast %278 : vector<16x1xf32> to vector<16x16xf32>
    %280 = arith.subf %276, %279 : vector<16x16xf32>
    %281 = math.exp %280 : vector<16x16xf32>
    %cst_126 = arith.constant dense<0.000000e+00> : vector<16xf32>
    %282 = vector.multi_reduction <add>, %281, %cst_126 [1] : vector<16x16xf32> to vector<16xf32>
    %283 = vector.shape_cast %282 : vector<16xf32> to vector<16x1xf32>
    %284 = tpu.reciprocal %283 {approx = true} : vector<16x1xf32> -> vector<16x1xf32>
    %285 = vector.broadcast %284 : vector<16x1xf32> to vector<16x16xf32>
    %286 = arith.mulf %281, %285 : vector<16x16xf32>
    %287 = arith.truncf %286 : vector<16x16xf32> to vector<16x16xbf16>
    %cst_127 = arith.constant dense<0.000000e+00> : vector<16x32xf32>
    %288 = tpu.matmul %287, %272, %cst_127 {dimension_numbers = #tpu.dot_dimension_numbers<[1], [0], [0], [1], [0, 0, 1, 1], [], []>} : vector<16x16xbf16>, vector<16x32xbf16>, vector<16x32xf32> -> vector<16x32xf32>
    %289 = vector.extract_strided_slice %240 {offsets = [0, 64], sizes = [16, 32], strides = [1, 1]} : vector<16x384xf32> to vector<16x32xf32>
    %cst_128 = arith.constant 0.176776692 : f32
    %290 = vector.broadcast %cst_128 : f32 to vector<16x32xf32>
    %291 = arith.mulf %289, %290 : vector<16x32xf32>
    %292 = arith.truncf %291 : vector<16x32xf32> to vector<16x32xbf16>
    %293 = vector.extract_strided_slice %240 {offsets = [0, 192], sizes = [16, 32], strides = [1, 1]} : vector<16x384xf32> to vector<16x32xf32>
    %294 = arith.truncf %293 : vector<16x32xf32> to vector<16x32xbf16>
    %295 = vector.extract_strided_slice %240 {offsets = [0, 320], sizes = [16, 32], strides = [1, 1]} : vector<16x384xf32> to vector<16x32xf32>
    %296 = arith.truncf %295 : vector<16x32xf32> to vector<16x32xbf16>
    "tpu.trace_start"() <{level = 10 : i32, message = "qd,kd->qk"}> : () -> ()
    %cst_129 = arith.constant dense<0.000000e+00> : vector<16x16xf32>
    %297 = tpu.matmul %292, %294, %cst_129 {dimension_numbers = #tpu.dot_dimension_numbers<[1], [1], [0], [0], [0, 0, 1, 0], [], []>} : vector<16x32xbf16>, vector<16x32xbf16>, vector<16x16xf32> -> vector<16x16xf32>
    "tpu.trace_stop"() : () -> ()
    %c2_130 = arith.constant 2 : index
    %c0_131 = arith.constant 0 : index
    %c0_132 = arith.constant 0 : index
    %298 = vector.load %arg2[%c2_130, %c0_131, %c0_132] : memref<4x16x16xf32, #tpu.memory_space<vmem>>, vector<1x16x16xf32>
    %299 = vector.shape_cast %298 : vector<1x16x16xf32> to vector<16x16xf32>
    %300 = arith.addf %297, %299 : vector<16x16xf32>
    %cst_133 = arith.constant dense<0xFF800000> : vector<16xf32>
    %301 = vector.multi_reduction <maximumf>, %300, %cst_133 [1] : vector<16x16xf32> to vector<16xf32>
    %302 = vector.shape_cast %301 : vector<16xf32> to vector<16x1xf32>
    %303 = vector.broadcast %302 : vector<16x1xf32> to vector<16x16xf32>
    %304 = arith.subf %300, %303 : vector<16x16xf32>
    %305 = math.exp %304 : vector<16x16xf32>
    %cst_134 = arith.constant dense<0.000000e+00> : vector<16xf32>
    %306 = vector.multi_reduction <add>, %305, %cst_134 [1] : vector<16x16xf32> to vector<16xf32>
    %307 = vector.shape_cast %306 : vector<16xf32> to vector<16x1xf32>
    %308 = tpu.reciprocal %307 {approx = true} : vector<16x1xf32> -> vector<16x1xf32>
    %309 = vector.broadcast %308 : vector<16x1xf32> to vector<16x16xf32>
    %310 = arith.mulf %305, %309 : vector<16x16xf32>
    %311 = arith.truncf %310 : vector<16x16xf32> to vector<16x16xbf16>
    %cst_135 = arith.constant dense<0.000000e+00> : vector<16x32xf32>
    %312 = tpu.matmul %311, %296, %cst_135 {dimension_numbers = #tpu.dot_dimension_numbers<[1], [0], [0], [1], [0, 0, 1, 1], [], []>} : vector<16x16xbf16>, vector<16x32xbf16>, vector<16x32xf32> -> vector<16x32xf32>
    %313 = vector.extract_strided_slice %240 {offsets = [0, 96], sizes = [16, 32], strides = [1, 1]} : vector<16x384xf32> to vector<16x32xf32>
    %cst_136 = arith.constant 0.176776692 : f32
    %314 = vector.broadcast %cst_136 : f32 to vector<16x32xf32>
    %315 = arith.mulf %313, %314 : vector<16x32xf32>
    %316 = arith.truncf %315 : vector<16x32xf32> to vector<16x32xbf16>
    %317 = vector.extract_strided_slice %240 {offsets = [0, 224], sizes = [16, 32], strides = [1, 1]} : vector<16x384xf32> to vector<16x32xf32>
    %318 = arith.truncf %317 : vector<16x32xf32> to vector<16x32xbf16>
    %319 = vector.extract_strided_slice %240 {offsets = [0, 352], sizes = [16, 32], strides = [1, 1]} : vector<16x384xf32> to vector<16x32xf32>
    %320 = arith.truncf %319 : vector<16x32xf32> to vector<16x32xbf16>
    "tpu.trace_start"() <{level = 10 : i32, message = "qd,kd->qk"}> : () -> ()
    %cst_137 = arith.constant dense<0.000000e+00> : vector<16x16xf32>
    %321 = tpu.matmul %316, %318, %cst_137 {dimension_numbers = #tpu.dot_dimension_numbers<[1], [1], [0], [0], [0, 0, 1, 0], [], []>} : vector<16x32xbf16>, vector<16x32xbf16>, vector<16x16xf32> -> vector<16x16xf32>
    "tpu.trace_stop"() : () -> ()
    %c3_138 = arith.constant 3 : index
    %c0_139 = arith.constant 0 : index
    %c0_140 = arith.constant 0 : index
    %322 = vector.load %arg2[%c3_138, %c0_139, %c0_140] : memref<4x16x16xf32, #tpu.memory_space<vmem>>, vector<1x16x16xf32>
    %323 = vector.shape_cast %322 : vector<1x16x16xf32> to vector<16x16xf32>
    %324 = arith.addf %321, %323 : vector<16x16xf32>
    %cst_141 = arith.constant dense<0xFF800000> : vector<16xf32>
    %325 = vector.multi_reduction <maximumf>, %324, %cst_141 [1] : vector<16x16xf32> to vector<16xf32>
    %326 = vector.shape_cast %325 : vector<16xf32> to vector<16x1xf32>
    %327 = vector.broadcast %326 : vector<16x1xf32> to vector<16x16xf32>
    %328 = arith.subf %324, %327 : vector<16x16xf32>
    %329 = math.exp %328 : vector<16x16xf32>
    %cst_142 = arith.constant dense<0.000000e+00> : vector<16xf32>
    %330 = vector.multi_reduction <add>, %329, %cst_142 [1] : vector<16x16xf32> to vector<16xf32>
    %331 = vector.shape_cast %330 : vector<16xf32> to vector<16x1xf32>
    %332 = tpu.reciprocal %331 {approx = true} : vector<16x1xf32> -> vector<16x1xf32>
    %333 = vector.broadcast %332 : vector<16x1xf32> to vector<16x16xf32>
    %334 = arith.mulf %329, %333 : vector<16x16xf32>
    %335 = arith.truncf %334 : vector<16x16xf32> to vector<16x16xbf16>
    %cst_143 = arith.constant dense<0.000000e+00> : vector<16x32xf32>
    %336 = tpu.matmul %335, %320, %cst_143 {dimension_numbers = #tpu.dot_dimension_numbers<[1], [0], [0], [1], [0, 0, 1, 1], [], []>} : vector<16x16xbf16>, vector<16x32xbf16>, vector<16x32xf32> -> vector<16x32xf32>
    %337 = tpu.concatenate %264, %288, %312, %336 in 1 : vector<16x32xf32>, vector<16x32xf32>, vector<16x32xf32>, vector<16x32xf32> -> vector<16x128xf32>
    %338 = arith.truncf %337 : vector<16x128xf32> to vector<16x128xbf16>
    %c1_144 = arith.constant 1 : index
    %c0_145 = arith.constant 0 : index
    %c0_146 = arith.constant 0 : index
    %339 = vector.load %arg4[%c1_144, %c0_145, %c0_146] : memref<2x128x128xbf16, #tpu.memory_space<vmem>>, vector<1x128x128xbf16>
    %340 = vector.shape_cast %339 : vector<1x128x128xbf16> to vector<128x128xbf16>
    %cst_147 = arith.constant dense<0.000000e+00> : vector<16x128xf32>
    %341 = tpu.matmul %338, %340, %cst_147 {dimension_numbers = #tpu.dot_dimension_numbers<[1], [0], [0], [1], [0, 0, 1, 1], [], []>} : vector<16x128xbf16>, vector<128x128xbf16>, vector<16x128xf32> -> vector<16x128xf32>
    %342 = arith.addf %196, %341 : vector<16x128xf32>
    %343 = vector.broadcast %204 : vector<1x128xf32> to vector<16x128xf32>
    %344 = arith.addf %342, %343 : vector<16x128xf32>
    %cst_148 = arith.constant dense<0.000000e+00> : vector<16xf32>
    %345 = vector.multi_reduction <add>, %344, %cst_148 [1] : vector<16x128xf32> to vector<16xf32>
    %346 = vector.shape_cast %345 : vector<16xf32> to vector<16x1xf32>
    %cst_149 = arith.constant 1.280000e+02 : f32
    %347 = vector.broadcast %cst_149 : f32 to vector<16x1xf32>
    %348 = arith.divf %346, %347 : vector<16x1xf32>
    %349 = vector.broadcast %348 : vector<16x1xf32> to vector<16x128xf32>
    %350 = arith.subf %344, %349 : vector<16x128xf32>
    %351 = arith.mulf %350, %350 : vector<16x128xf32>
    %cst_150 = arith.constant dense<0.000000e+00> : vector<16xf32>
    %352 = vector.multi_reduction <add>, %351, %cst_150 [1] : vector<16x128xf32> to vector<16xf32>
    %353 = vector.shape_cast %352 : vector<16xf32> to vector<16x1xf32>
    %cst_151 = arith.constant 1.280000e+02 : f32
    %354 = vector.broadcast %cst_151 : f32 to vector<16x1xf32>
    %355 = arith.divf %353, %354 : vector<16x1xf32>
    %356 = vector.broadcast %348 : vector<16x1xf32> to vector<16x128xf32>
    %357 = arith.subf %344, %356 : vector<16x128xf32>
    %cst_152 = arith.constant 9.99999974E-6 : f32
    %358 = vector.broadcast %cst_152 : f32 to vector<16x1xf32>
    %359 = arith.addf %355, %358 : vector<16x1xf32>
    %360 = math.rsqrt %359 : vector<16x1xf32>
    %361 = vector.broadcast %360 : vector<16x1xf32> to vector<16x128xf32>
    %362 = arith.mulf %357, %361 : vector<16x128xf32>
    %363 = vector.broadcast %206 : vector<1x128xf32> to vector<16x128xf32>
    %364 = arith.mulf %362, %363 : vector<16x128xf32>
    %365 = vector.broadcast %208 : vector<1x128xf32> to vector<16x128xf32>
    %366 = arith.addf %364, %365 : vector<16x128xf32>
    %367 = arith.truncf %366 : vector<16x128xf32> to vector<16x128xbf16>
    %c1_153 = arith.constant 1 : index
    %c0_154 = arith.constant 0 : index
    %c0_155 = arith.constant 0 : index
    %368 = vector.load %arg5[%c1_153, %c0_154, %c0_155] : memref<2x128x256xbf16, #tpu.memory_space<vmem>>, vector<1x128x256xbf16>
    %369 = vector.shape_cast %368 : vector<1x128x256xbf16> to vector<128x256xbf16>
    %cst_156 = arith.constant dense<0.000000e+00> : vector<16x256xf32>
    %370 = tpu.matmul %367, %369, %cst_156 {dimension_numbers = #tpu.dot_dimension_numbers<[1], [0], [0], [1], [0, 0, 1, 1], [], []>} : vector<16x128xbf16>, vector<128x256xbf16>, vector<16x256xf32> -> vector<16x256xf32>
    %371 = vector.broadcast %210 : vector<1x256xf32> to vector<16x256xf32>
    %372 = arith.addf %370, %371 : vector<16x256xf32>
    %373 = arith.mulf %372, %372 : vector<16x256xf32>
    %374 = arith.mulf %372, %373 : vector<16x256xf32>
    %cst_157 = arith.constant 4.471500e-02 : f32
    %375 = vector.broadcast %cst_157 : f32 to vector<16x256xf32>
    %376 = arith.mulf %375, %374 : vector<16x256xf32>
    %377 = arith.addf %372, %376 : vector<16x256xf32>
    %cst_158 = arith.constant 0.797884583 : f32
    %378 = vector.broadcast %cst_158 : f32 to vector<16x256xf32>
    %379 = arith.mulf %378, %377 : vector<16x256xf32>
    %380 = math.tanh %379 : vector<16x256xf32>
    %cst_159 = arith.constant 1.000000e+00 : f32
    %381 = vector.broadcast %cst_159 : f32 to vector<16x256xf32>
    %382 = arith.addf %381, %380 : vector<16x256xf32>
    %cst_160 = arith.constant 5.000000e-01 : f32
    %383 = vector.broadcast %cst_160 : f32 to vector<16x256xf32>
    %384 = arith.mulf %383, %382 : vector<16x256xf32>
    %385 = arith.mulf %372, %384 : vector<16x256xf32>
    %386 = arith.truncf %385 : vector<16x256xf32> to vector<16x256xbf16>
    %c1_161 = arith.constant 1 : index
    %c0_162 = arith.constant 0 : index
    %c0_163 = arith.constant 0 : index
    %387 = vector.load %arg6[%c1_161, %c0_162, %c0_163] : memref<2x256x128xbf16, #tpu.memory_space<vmem>>, vector<1x256x128xbf16>
    %388 = vector.shape_cast %387 : vector<1x256x128xbf16> to vector<256x128xbf16>
    %cst_164 = arith.constant dense<0.000000e+00> : vector<16x128xf32>
    %389 = tpu.matmul %386, %388, %cst_164 {dimension_numbers = #tpu.dot_dimension_numbers<[1], [0], [0], [1], [0, 0, 1, 1], [], []>} : vector<16x256xbf16>, vector<256x128xbf16>, vector<16x128xf32> -> vector<16x128xf32>
    %390 = arith.addf %344, %389 : vector<16x128xf32>
    %391 = vector.broadcast %212 : vector<1x128xf32> to vector<16x128xf32>
    %392 = arith.addf %390, %391 : vector<16x128xf32>
    %c2_165 = arith.constant 2 : index
    %c0_166 = arith.constant 0 : index
    %c0_167 = arith.constant 0 : index
    %393 = vector.load %arg7[%c2_165, %c0_166, %c0_167] : memref<3x8x384xf32, #tpu.memory_space<vmem>>, vector<1x1x128xf32>
    %394 = vector.shape_cast %393 : vector<1x1x128xf32> to vector<1x128xf32>
    %c2_168 = arith.constant 2 : index
    %c1_169 = arith.constant 1 : index
    %c0_170 = arith.constant 0 : index
    %395 = vector.load %arg7[%c2_168, %c1_169, %c0_170] : memref<3x8x384xf32, #tpu.memory_space<vmem>>, vector<1x1x128xf32>
    %396 = vector.shape_cast %395 : vector<1x1x128xf32> to vector<1x128xf32>
    %cst_171 = arith.constant dense<0.000000e+00> : vector<16xf32>
    %397 = vector.multi_reduction <add>, %392, %cst_171 [1] : vector<16x128xf32> to vector<16xf32>
    %398 = vector.shape_cast %397 : vector<16xf32> to vector<16x1xf32>
    %cst_172 = arith.constant 1.280000e+02 : f32
    %399 = vector.broadcast %cst_172 : f32 to vector<16x1xf32>
    %400 = arith.divf %398, %399 : vector<16x1xf32>
    %401 = vector.broadcast %400 : vector<16x1xf32> to vector<16x128xf32>
    %402 = arith.subf %392, %401 : vector<16x128xf32>
    %403 = arith.mulf %402, %402 : vector<16x128xf32>
    %cst_173 = arith.constant dense<0.000000e+00> : vector<16xf32>
    %404 = vector.multi_reduction <add>, %403, %cst_173 [1] : vector<16x128xf32> to vector<16xf32>
    %405 = vector.shape_cast %404 : vector<16xf32> to vector<16x1xf32>
    %cst_174 = arith.constant 1.280000e+02 : f32
    %406 = vector.broadcast %cst_174 : f32 to vector<16x1xf32>
    %407 = arith.divf %405, %406 : vector<16x1xf32>
    %408 = vector.broadcast %400 : vector<16x1xf32> to vector<16x128xf32>
    %409 = arith.subf %392, %408 : vector<16x128xf32>
    %cst_175 = arith.constant 9.99999974E-6 : f32
    %410 = vector.broadcast %cst_175 : f32 to vector<16x1xf32>
    %411 = arith.addf %407, %410 : vector<16x1xf32>
    %412 = math.rsqrt %411 : vector<16x1xf32>
    %413 = vector.broadcast %412 : vector<16x1xf32> to vector<16x128xf32>
    %414 = arith.mulf %409, %413 : vector<16x128xf32>
    %415 = vector.broadcast %394 : vector<1x128xf32> to vector<16x128xf32>
    %416 = arith.mulf %414, %415 : vector<16x128xf32>
    %417 = vector.broadcast %396 : vector<1x128xf32> to vector<16x128xf32>
    %418 = arith.addf %416, %417 : vector<16x128xf32>
    %419 = vector.extract_strided_slice %418 {offsets = [0, 0], sizes = [8, 128], strides = [1, 1]} : vector<16x128xf32> to vector<8x128xf32>
    %c0_176 = arith.constant 0 : index
    %c0_177 = arith.constant 0 : index
    %420 = vector.load %arg8[%c0_176, %c0_177] : memref<8x128xf32, #tpu.memory_space<vmem>>, vector<8x128xf32>
    tpu.vector_store %arg8[%c0_176, %c0_177], %419 {strides = array<i32>} : memref<8x128xf32, #tpu.memory_space<vmem>>, vector<8x128xf32>,
    return
  }
  func.func @transform_0(%arg0: i32) -> (i32, i32) {
    %c0_i32 = arith.constant 0 : i32
    %c0_i32_0 = arith.constant 0 : i32
    %c0_i32_1 = arith.constant 0 : i32
    return %c0_i32, %c0_i32_0 : i32, i32
  }
  func.func @transform_1(%arg0: i32) -> (i32, i32, i32) {
    %c0_i32 = arith.constant 0 : i32
    %c0_i32_0 = arith.constant 0 : i32
    %c0_i32_1 = arith.constant 0 : i32
    %c0_i32_2 = arith.constant 0 : i32
    return %c0_i32, %c0_i32_0, %c0_i32_1 : i32, i32, i32
  }
  func.func @transform_2(%arg0: i32) -> (i32, i32, i32) {
    %c0_i32 = arith.constant 0 : i32
    %c0_i32_0 = arith.constant 0 : i32
    %c0_i32_1 = arith.constant 0 : i32
    %c0_i32_2 = arith.constant 0 : i32
    return %c0_i32, %c0_i32_0, %c0_i32_1 : i32, i32, i32
  }
  func.func @transform_3(%arg0: i32) -> (i32, i32, i32) {
    %c0_i32 = arith.constant 0 : i32
    %c0_i32_0 = arith.constant 0 : i32
    %c0_i32_1 = arith.constant 0 : i32
    %c0_i32_2 = arith.constant 0 : i32
    return %c0_i32, %c0_i32_0, %c0_i32_1 : i32, i32, i32
  }
  func.func @transform_4(%arg0: i32) -> (i32, i32, i32) {
    %c0_i32 = arith.constant 0 : i32
    %c0_i32_0 = arith.constant 0 : i32
    %c0_i32_1 = arith.constant 0 : i32
    %c0_i32_2 = arith.constant 0 : i32
    return %c0_i32, %c0_i32_0, %c0_i32_1 : i32, i32, i32
  }
  func.func @transform_5(%arg0: i32) -> (i32, i32, i32) {
    %c0_i32 = arith.constant 0 : i32
    %c0_i32_0 = arith.constant 0 : i32
    %c0_i32_1 = arith.constant 0 : i32
    %c0_i32_2 = arith.constant 0 : i32
    return %c0_i32, %c0_i32_0, %c0_i32_1 : i32, i32, i32
  }
  func.func @transform_6(%arg0: i32) -> (i32, i32, i32) {
    %c0_i32 = arith.constant 0 : i32
    %c0_i32_0 = arith.constant 0 : i32
    %c0_i32_1 = arith.constant 0 : i32
    %c0_i32_2 = arith.constant 0 : i32
    return %c0_i32, %c0_i32_0, %c0_i32_1 : i32, i32, i32
  }
  func.func @transform_7(%arg0: i32) -> (i32, i32) {
    %c0_i32 = arith.constant 0 : i32
    %c0_i32_0 = arith.constant 0 : i32
    %c0_i32_1 = arith.constant 0 : i32
    return %c0_i32, %c0_i32_0 : i32, i32
  }
}

</mosaic_0001>

<bundles_post_ra>
// kernel: tpu_custom_call.1
= control target key start
LH: loop header
LB: loop body
LE: loop exit
PB: predicated region body
PF: predicated region fallthrough
CT: control target
= control target key end

     0   :  { %12 = vsyncpa [#allocation3], 0  ;;  %s4185_s0 = inlined_call_operand.hbm [shape: f32[16,128], index: 0, kind: input, shape index: {}]   ;;  %s4186_s1 = inlined_call_operand.hbm [shape: f32[4,16,16], index: 1, kind: input, shape index: {}]   ;;  %s4187_s2 = inlined_call_operand.hbm [shape: bf16[2,128,384], index: 2, kind: input, shape index: {}]   ;;  %s4188_s3 = inlined_call_operand.hbm [shape: bf16[2,128,128], index: 3, kind: input, shape index: {}]   ;;  %s4189_s4 = inlined_call_operand.hbm [shape: bf16[2,128,256], index: 4, kind: input, shape index: {}]   ;;  %s4190_s5 = inlined_call_operand.hbm [shape: bf16[2,256,128], index: 5, kind: input, shape index: {}]   ;;  %s4191_s6 = inlined_call_operand.hbm [shape: f32[3,8,384], index: 6, kind: input, shape index: {}]   ;;  %s4192_s7 = inlined_call_operand.hbm [shape: f32[8,128], index: 7, kind: output, shape index: {}]  }
   0x1   :  { %13 = vsyncpa [#allocation6], 0 }
   0x2   :  { %14 = vsyncpa [#allocation9], 0 }
   0x3   :  { %15 = vsyncpa [#allocation12], 0 }
   0x4   :  { %16 = vsyncpa [#allocation4], 0  ;;  %s3737_s24 = smov [#allocation5]   ;;  %s3738_s26 = smov [#allocation8]  }
   0x5   :  { %s34_s25 = sshll.u32 %s3737_s24, 4  ;;  %s58_s27 = sshll.u32 %s3738_s26, 4  ;;  %s35_s25 = int_to_ptr.vmem [resolvable:$true] %s34_s25  ;;  %s3798_s27 = int_to_ptr.vmem [resolvable:$true] %s58_s27 }
   0x6   :  { %s3551_s30 = scalar_lea.hbm %s4186_s1, 1024 }
   0x7   :  { %p3552_p0 = scmp.ne.s32.totalorder %s4186_s1, %s3551_s30  ;;  %p3555_p1 = scmp.lt.u32.totalorder %s3551_s30, %s4186_s1 }
   0x9   :  { %p3557_p2 = pnand %p3555_p1, %p3552_p0 }
   0xb   :  { %3560 = shalt.err (!%p3557_p2)
}
   0xc   :  { %s3561_s12 = scalar_lea.vmem %s35_s25, 1024  ;;  %p3566_p4 = scmp.lt.s32.totalorder %s35_s25, %s35_s25 }
   0xd   :  { %p3562_p3 = scmp.ne.s32.totalorder %s35_s25, %s3561_s12  ;;  %p3567_p5 = scmp.lt.s32.totalorder %s3561_s12, %s3561_s12 }
   0xf   :  { %p3568_p6 = por %p3567_p5, %p3566_p4 }
  0x11   :  { %p3569_p7 = pnand %p3568_p6, %p3562_p3 }
  0x13   :  { %3572 = shalt.err (!%p3569_p7)
}
  0x14   :  { %s3739_s13 = smov 128   ;;  %s3740_s14 = smov 8  }
  0x15   :  { %40 = dma.hbm_to_vmem [thread:$0]  %s4186_s1, 1024, %s35_s25, [#allocation6], %s3739_s13, %s3739_s13, %s3740_s14  }
  0x16   :  { %s3573_s19 = scalar_lea.hbm %s4188_s3, 2048 }
  0x17   :  { %p3574_p8 = scmp.ne.s32.totalorder %s4188_s3, %s3573_s19  ;;  %p3577_p9 = scmp.lt.u32.totalorder %s3573_s19, %s4188_s3 }
  0x19   :  { %p3579_p10 = pnand %p3577_p9, %p3574_p8 }
  0x1b   :  { %3582 = shalt.err (!%p3579_p10)
}
  0x1c   :  { %s3583_s24 = scalar_lea.vmem %s3798_s27, 2048  ;;  %p3588_p12 = scmp.lt.s32.totalorder %s3798_s27, %s3798_s27 }
  0x1d   :  { %p3584_p11 = scmp.ne.s32.totalorder %s3798_s27, %s3583_s24  ;;  %p3589_p13 = scmp.lt.s32.totalorder %s3583_s24, %s3583_s24 }
  0x1f   :  { %p3590_p0 = por %p3589_p13, %p3588_p12 }
  0x21   :  { %p3591_p1 = pnand %p3590_p0, %p3584_p11 }
  0x23   :  { %3594 = shalt.err (!%p3591_p1)
}
  0x24   :  { %s3741_s1 = smov 64   ;;  %s3742_s25 = smov 4  }
  0x25   :  { %64 = dma.hbm_to_vmem [thread:$0]  %s4188_s3, 2048, %s3798_s27, [#allocation9], %s3741_s1, %s3741_s1, %s3742_s25  }
  0x26   :  { %s3743_s29 = smov [#allocation11]   ;;  %s3744_s8 = smov [#allocation2]  }
  0x27   :  { %s82_s30 = sshll.u32 %s3743_s29, 4  ;;  %s22_s9 = sshll.u32 %s3744_s8, 4  ;;  %s83_s30 = int_to_ptr.vmem [resolvable:$true] %s82_s30  ;;  %s3834_s9 = int_to_ptr.vmem [resolvable:$true] %s22_s9 }
  0x28   :  { %s3595_s12 = scalar_lea.hbm %s4190_s5, 4096 }
  0x29   :  { %p3596_p2 = scmp.ne.s32.totalorder %s4190_s5, %s3595_s12  ;;  %p3599_p3 = scmp.lt.u32.totalorder %s3595_s12, %s4190_s5 }
  0x2b   :  { %p3601_p4 = pnand %p3599_p3, %p3596_p2 }
  0x2d   :  { %3604 = shalt.err (!%p3601_p4)
}
  0x2e   :  { %s3605_s3 = scalar_lea.vmem %s83_s30, 4096  ;;  %p3610_p6 = scmp.lt.s32.totalorder %s83_s30, %s83_s30 }
  0x2f   :  { %p3606_p5 = scmp.ne.s32.totalorder %s83_s30, %s3605_s3  ;;  %p3611_p7 = scmp.lt.s32.totalorder %s3605_s3, %s3605_s3 }
  0x31   :  { %p3612_p8 = por %p3611_p7, %p3610_p6 }
  0x33   :  { %p3613_p9 = pnand %p3612_p8, %p3606_p5 }
  0x35   :  { %3616 = shalt.err (!%p3613_p9)
}
  0x36   :  { %88 = dma.hbm_to_vmem [thread:$0]  %s4190_s5, 4096, %s83_s30, [#allocation12], %s3741_s1, %s3741_s1, %s3742_s25  }
  0x37   :  { %s3617_s22 = scalar_lea.hbm %s4185_s0, 256 }
  0x38   :  { %p3618_p10 = scmp.ne.s32.totalorder %s4185_s0, %s3617_s22  ;;  %p3621_p11 = scmp.lt.u32.totalorder %s3617_s22, %s4185_s0 }
  0x3a   :  { %p3623_p12 = pnand %p3621_p11, %p3618_p10 }
  0x3c   :  { %3626 = shalt.err (!%p3623_p12)
}
  0x3d   :  { %s3627_s29 = scalar_lea.vmem %s3834_s9, 256  ;;  %p3632_p0 = scmp.lt.s32.totalorder %s3834_s9, %s3834_s9 }
  0x3e   :  { %p3628_p13 = scmp.ne.s32.totalorder %s3834_s9, %s3627_s29  ;;  %p3633_p1 = scmp.lt.s32.totalorder %s3627_s29, %s3627_s29 }
  0x40   :  { %p3634_p2 = por %p3633_p1, %p3632_p0 }
  0x42   :  { %p3635_p3 = pnand %p3634_p2, %p3628_p13 }
  0x44   :  { %3638 = shalt.err (!%p3635_p3)
}
  0x45   :  { %28 = dma.hbm_to_vmem [thread:$0]  %s4185_s0, 256, %s3834_s9, [#allocation3], %s3739_s13, %s3739_s13, %s3740_s14  }
  0x46   :  { %s3745_s30 = smov [#allocation7]   ;;  %s3639_s12 = scalar_lea.hbm %s4187_s2, 6144 }
  0x47   :  { %s46_s8 = sshll.u32 %s3745_s30, 4  ;;  %p3640_p4 = scmp.ne.s32.totalorder %s4187_s2, %s3639_s12  ;;  %s47_s8 = int_to_ptr.vmem [resolvable:$true] %s46_s8 }
  0x48   :  { %p3643_p5 = scmp.lt.u32.totalorder %s3639_s12, %s4187_s2 }
  0x4a   :  { %p3645_p6 = pnand %p3643_p5, %p3640_p4 }
  0x4c   :  { %3648 = shalt.err (!%p3645_p6)
}
  0x4d   :  { %s3649_s3 = scalar_lea.vmem %s47_s8, 6144  ;;  %p3654_p8 = scmp.lt.s32.totalorder %s47_s8, %s47_s8 }
  0x4e   :  { %p3650_p7 = scmp.ne.s32.totalorder %s47_s8, %s3649_s3  ;;  %p3655_p9 = scmp.lt.s32.totalorder %s3649_s3, %s3649_s3 }
  0x50   :  { %p3656_p10 = por %p3655_p9, %p3654_p8 }
  0x52   :  { %p3657_p11 = pnand %p3656_p10, %p3650_p7 }
  0x54   :  { %3660 = shalt.err (!%p3657_p11)
}
  0x55   :  { %s3746_s0 = smov 192   ;;  %s3747_s9 = smov 12  }
  0x56   :  { %52 = dma.hbm_to_vmem [thread:$0]  %s4187_s2, 6144, %s47_s8, [#allocation6], %s3746_s0, %s3746_s0, %s3747_s9  }
  0x57   :  { %s3748_s20 = smov [#allocation10]   ;;  %s3749_s22 = smov [#allocation13]  }
  0x58   :  { %s70_s21 = sshll.u32 %s3748_s20, 4  ;;  %s94_s23 = sshll.u32 %s3749_s22, 4  ;;  %s71_s21 = int_to_ptr.vmem [resolvable:$true] %s70_s21  ;;  %s95_s23 = int_to_ptr.vmem [resolvable:$true] %s94_s23 }
  0x59   :  { %s3661_s28 = scalar_lea.hbm %s4189_s4, 4096 }
  0x5a   :  { %p3662_p12 = scmp.ne.s32.totalorder %s4189_s4, %s3661_s28  ;;  %p3665_p13 = scmp.lt.u32.totalorder %s3661_s28, %s4189_s4 }
  0x5c   :  { %p3667_p0 = pnand %p3665_p13, %p3662_p12 }
  0x5e   :  { %3670 = shalt.err (!%p3667_p0)
}
  0x5f   :  { %s3671_s2 = scalar_lea.vmem %s71_s21, 4096  ;;  %p3676_p2 = scmp.lt.s32.totalorder %s71_s21, %s71_s21 }
  0x60   :  { %p3672_p1 = scmp.ne.s32.totalorder %s71_s21, %s3671_s2  ;;  %p3677_p3 = scmp.lt.s32.totalorder %s3671_s2, %s3671_s2 }
  0x62   :  { %p3678_p4 = por %p3677_p3, %p3676_p2 }
  0x64   :  { %p3679_p5 = pnand %p3678_p4, %p3672_p1 }
  0x66   :  { %3682 = shalt.err (!%p3679_p5)
}
  0x67   :  { %76 = dma.hbm_to_vmem [thread:$0]  %s4189_s4, 4096, %s71_s21, [#allocation9], %s3739_s13, %s3739_s13, %s3740_s14  }
  0x68   :  { %s3683_s15 = scalar_lea.hbm %s4191_s6, 1152 }
  0x69   :  { %p3684_p6 = scmp.ne.s32.totalorder %s4191_s6, %s3683_s15  ;;  %p3687_p7 = scmp.lt.u32.totalorder %s3683_s15, %s4191_s6 }
  0x6b   :  { %p3689_p8 = pnand %p3687_p7, %p3684_p6 }
  0x6d   :  { %3692 = shalt.err (!%p3689_p8)
}
  0x6e   :  { %s3693_s0 = scalar_lea.vmem %s95_s23, 1152  ;;  %p3698_p10 = scmp.lt.s32.totalorder %s95_s23, %s95_s23 }
  0x6f   :  { %p3694_p9 = scmp.ne.s32.totalorder %s95_s23, %s3693_s0  ;;  %p3699_p11 = scmp.lt.s32.totalorder %s3693_s0, %s3693_s0 }
  0x71   :  { %p3700_p12 = por %p3699_p11, %p3698_p10 }
  0x73   :  { %p3701_p13 = pnand %p3700_p12, %p3694_p9 }
  0x75   :  { %3704 = shalt.err (!%p3701_p13)
}
  0x76   :  { %s3750_s4 = smov 384   ;;  %s3751_s13 = smov 24  }
  0x77   :  { %100 = dma.hbm_to_vmem [thread:$0]  %s4191_s6, 1152, %s95_s23, [#allocation12], %s3750_s4, %s3750_s4, %s3751_s13  }
  0x78   :  { %3727 = dma.done.wait [#allocation3], 256  }
  0x79   :  { %3728 = vsyncadd [#allocation3], 4294967040 }
  0x7a   :  { %3729 = dma.done.wait [#allocation6], 7168  }
  0x7b   :  { %3730 = vsyncadd [#allocation6], 4294960128 }
  0x7c   :  { %3731 = dma.done.wait [#allocation9], 6144  }
  0x7d   :  { %3732 = vsyncadd [#allocation9], 4294961152 }
  0x7e   :  { %3733 = dma.done.wait [#allocation12], 5248  }
  0x7f   :  { %3734 = vsyncadd [#allocation12], 4294962048  ;;  %v123_v0 = vld [vmem:[#allocation2] sm:$0xff]  ;;  %v124_v1 = vld [vmem:[#allocation2 + $0x8] sm:$0xff]  ;;  %v3752_v4 = vmov 0.0   ;;  %v3753_v30 = vmov 0   ;;  %v196_v53 = vlaneseq }
  0x80   :  { %135 = vadd.xlane.f32.xlu0 %v123_v0  ;;  %v3291_v2 = vld [vmem:[#allocation7 + $0x4] ss:$12 sps:$4 sm:$0xff]   ;;  %v3293_v3 = vld [vmem:[#allocation7] ss:$12 sps:$4 sm:$0xff]   ;;  %3064 = vmatprep.subr.bf16.mxu1 %v3752_v4  ;;  %v3294_v5 = vld [vmem:[#allocation7 + $0x8] ss:$12 sps:$4 sm:$0xff]  }
  0x81   :  { %v3295_v6 = vld [vmem:[#allocation7 + $0x1c] ss:$12 sps:$4 sm:$0xff]   ;;  %339 = vmatprep.subr.bf16.mxu0 %v3291_v2  ;;  %3065 = vmatpush3.bf16.msra.mxu1 %v3294_v5  ;;  %v3297_v15 = vld [vmem:[#allocation7 + $0x18] ss:$12 sps:$4 sm:$0xff]   ;;  %v3298_v16 = vld [vmem:[#allocation7 + $0x20] ss:$12 sps:$4 sm:$0xff]  }
  0x82   :  { %340 = vmatpush1.bf16.msra.mxu0 %v3293_v3  ;;  %3066 = vmatprep.subr.bf16.mxu1 %v3752_v4  ;;  %v3299_v17 = vld [vmem:[#allocation7 + $0x34] ss:$12 sps:$4 sm:$0xff]   ;;  %v3301_v18 = vld [vmem:[#allocation7 + $0x30] ss:$12 sps:$4 sm:$0xff]   ;;  %v3302_v19 = vld [vmem:[#allocation7 + $0x38] ss:$12 sps:$4 sm:$0xff]  }
  0x83   :  { %341 = vmatprep.subr.bf16.mxu0 %v3295_v6  ;;  %v3303_v20 = vld [vmem:[#allocation7 + $0x4c] ss:$12 sps:$4 sm:$0xff]   ;;  %v3305_v21 = vld [vmem:[#allocation7 + $0x48] ss:$12 sps:$4 sm:$0xff]   ;;  %v3306_v22 = vld [vmem:[#allocation7 + $0x50] ss:$12 sps:$4 sm:$0xff]   ;;  %371 = vmatprep.mubr.bf16.mxu0 %v3753_v30 }
  0x84   :  { %137 = vadd.xlane.f32.xlu0 %v124_v1  ;;  %v3307_v23 = vld [vmem:[#allocation7 + $0x64] ss:$12 sps:$4 sm:$0xff]   ;;  %v3309_v24 = vld [vmem:[#allocation7 + $0x60] ss:$12 sps:$4 sm:$0xff]   ;;  %v3310_v25 = vld [vmem:[#allocation7 + $0x68] ss:$12 sps:$4 sm:$0xff]  }
  0x85   :  { %3067 = vmatpush3.bf16.msra.mxu1 %v3298_v16  ;;  %v3311_v26 = vld [vmem:[#allocation7 + $0x7c] ss:$12 sps:$4 sm:$0xff]   ;;  %v3313_v27 = vld [vmem:[#allocation7 + $0x78] ss:$12 sps:$4 sm:$0xff]   ;;  %v3314_v28 = vld [vmem:[#allocation7 + $0x80] ss:$12 sps:$4 sm:$0xff]  }
  0x86   :  { %342 = vmatpush1.bf16.msra.mxu0 %v3297_v15  ;;  %3068 = vmatprep.subr.bf16.mxu1 %v3752_v4  ;;  %v3315_v29 = vld [vmem:[#allocation7 + $0x94] ss:$12 sps:$4 sm:$0xff]   ;;  %vm3754_vm0 = vmmov 0   ;;  %v3317_v31 = vld [vmem:[#allocation7 + $0x90] ss:$12 sps:$4 sm:$0xff]   ;;  %v3936_v54 = vshrl.u32 %v196_v53, 7 }
  0x87   :  { %343 = vmatprep.subr.bf16.mxu0 %v3299_v17  ;;  %3080 = vmatprep.mubr.msk.bf16.mxu1 %vm3754_vm0, %v3752_v4  ;;  %v3318_v32 = vld [vmem:[#allocation7 + $0x98] ss:$12 sps:$4 sm:$0xff]   ;;  %v3321_v34 = vld [vmem:[#allocation7 + $0xa8] ss:$12 sps:$4 sm:$0xff]   ;;  %v3322_v35 = vld [vmem:[#allocation7 + $0xb0] ss:$12 sps:$4 sm:$0xff]  }
  0x88   :  { %v3319_v33 = vld [vmem:[#allocation7 + $0xac] ss:$12 sps:$4 sm:$0xff]   ;;  %v125_v44 = vld [vmem:[#allocation13] ss:$0 sm:$0xff]  ;;  %v126_v48 = vld [vmem:[#allocation13 + $0x1] ss:$0 sm:$0xff] }
  0x89   :  { %3069 = vmatpush3.bf16.msra.mxu1 %v3302_v19  ;;  %v3939_v55 = vsub.s32 0, %v3936_v54  ;;  %v128_v56 = vld [vmem:[#allocation13 + $0x2] ss:$8 sm:$0x7]  ;;  %v206_v57 = vsub.s32 2, %v3936_v54  ;;  %v3943_v58 = vsub.s32 1, %v3936_v54 }
  0x8a   :  { %344 = vmatpush1.bf16.msra.mxu0 %v3301_v18  ;;  %3070 = vmatprep.subr.bf16.mxu1 %v3752_v4  ;;  %vm430_vm1 = vcmask 261120   ;;  %v428_v19 = vld [vmem:[#allocation5] sm:$0xff]  ;;  %vm478_vm2 = vcmask 130048   ;;  %s3755_s6 = smov 96   ;;  %s3756_s27 = smov 32   ;;  %vm947_vm3 = vcmask 523264  }
  0x8b   :  { %345 = vmatprep.subr.bf16.mxu0 %v3303_v20  ;;  %v199_v59 = vrot.slane %v128_v56, %v3939_v55  ;;  %v207_v60 = vrot.slane %v128_v56, %v206_v57  ;;  %v203_v63 = vrot.slane %v128_v56, %v3943_v58  ;;  %vm950_vm4 = vcmask 785408  }
  0x8d   :  { %3071 = vmatpush3.bf16.msra.mxu1 %v3306_v22 }
  0x8e   :  { %346 = vmatpush1.bf16.msra.mxu0 %v3305_v21  ;;  %3072 = vmatprep.subr.bf16.mxu1 %v3752_v4  ;;  %v429_v21 = vld [vmem:[#allocation5 + $0x8] sm:$0xff] }
  0x8f   :  { %347 = vmatprep.subr.bf16.mxu0 %v3307_v23 }
  0x91   :  { %3073 = vmatpush3.bf16.msra.mxu1 %v3310_v25 }
  0x92   :  { %348 = vmatpush1.bf16.msra.mxu0 %v3309_v24  ;;  %3074 = vmatprep.subr.bf16.mxu1 %v3752_v4 }
  0x93   :  { %349 = vmatprep.subr.bf16.mxu0 %v3311_v26 }
  0x95   :  { %3075 = vmatpush3.bf16.msra.mxu1 %v3314_v28 }
  0x96   :  { %350 = vmatpush1.bf16.msra.mxu0 %v3313_v27  ;;  %3076 = vmatprep.subr.bf16.mxu1 %v3752_v4 }
  0x97   :  { %351 = vmatprep.subr.bf16.mxu0 %v3315_v29 }
  0x99   :  { %3077 = vmatpush3.bf16.msra.mxu1 %v3318_v32 }
  0x9a   :  { %352 = vmatpush1.bf16.msra.mxu0 %v3317_v31  ;;  %3078 = vmatprep.subr.bf16.mxu1 %v3752_v4 }
  0x9b   :  { %353 = vmatprep.subr.bf16.mxu0 %v3319_v33 }
  0x9d   :  { %3079 = vmatpush3.bf16.msra.mxu1 %v3322_v35 }
  0x9e   :  { %354 = vmatpush1.bf16.msra.mxu0 %v3321_v34  ;;  %3084 = vmatprep.subr.bf16.mxu1 %v3752_v4 }
  0x9f   :  { %3108 = vmatprep.subr.bf16.mxu0 %v3752_v4 }
 0x10d   :  { %v136_v7 = vpop.xlane.xlu0 %135 }
 0x10e   :  { %v140_v8 = vmul.f32 0.0078125, %v136_v7 }
 0x110   :  { %v3911_v9 = vsub.f32 %v123_v0, %v140_v8 }
 0x111   :  { %v138_v10 = vpop.xlane.xlu0 %137 }
 0x112   :  { %v141_v11 = vmul.f32 0.0078125, %v138_v10  ;;  %v144_v12 = vmul.f32 %v3911_v9, %v3911_v9 }
 0x114   :  { %v3915_v13 = vsub.f32 %v124_v1, %v141_v11  ;;  %146 = vadd.xlane.f32.xlu1 %v144_v12 }
 0x116   :  { %v145_v14 = vmul.f32 %v3915_v13, %v3915_v13 }
 0x118   :  { %148 = vadd.xlane.f32.xlu1 %v145_v14 }
 0x1a1   :  { %v147_v36 = vpop.xlane.xlu1 %146 }
 0x1a2   :  { %v150_v37 = vmul.f32 0.0078125, %v147_v36 }
 0x1a4   :  { %v152_v38 = vadd.f32 1e-05, %v150_v37 }
 0x1a5   :  { %v149_v39 = vpop.xlane.xlu1 %148 }
 0x1a6   :  { %3451 = vrsqrt.f32 %v152_v38  ;;  %v151_v40 = vmul.f32 0.0078125, %v149_v39 }
 0x1a8   :  { %v153_v41 = vadd.f32 1e-05, %v151_v40 }
 0x1aa   :  { %3453 = vrsqrt.f32 %v153_v41 }
 0x1b0   :  { %v3452_v42 = vpop.eup %3451 }
 0x1b1   :  { %v156_v43 = vmul.f32 %v3452_v42, %v3911_v9 }
 0x1b3   :  { %v158_v47 = vmul.f32 %v156_v43, %v125_v44 }
 0x1b4   :  { %v3454_v45 = vpop.eup %3453 }
 0x1b5   :  { %v157_v46 = vmul.f32 %v3454_v45, %v3915_v13  ;;  %v160_v50 = vadd.f32 %v158_v47, %v126_v48 }
 0x1b7   :  { %v159_v49 = vmul.f32 %v157_v46, %v125_v44 }
 0x1b9   :  { %v161_v51 = vadd.f32 %v159_v49, %v126_v48 }
 0x1bb   :  { %v162_v52 = vpack.c.bf16 %v161_v51, %v160_v50 }
 0x1bd   :  { %372 = vmatmul.mubr.bf16.vlgmr.msra.gmra.mrb[0].mxu0 %v162_v52  ;;  %3081 = vmatmul.mubr.bf16.vlgmr.msra.gmra.mrb[0].mxu1 %v162_v52 }
 0x1be   :  { %3086 = vmatprep.mubr.msk.bf16.mxu1 %vm3754_vm0, %v3752_v4  ;;  %3110 = vmatprep.mubr.msk.bf16.mxu0 %vm3754_vm0, %v3752_v4 }
 0x290   :  { %v373_v61 = vpop.f32.mrb[0].mxu0  ;;  %v416_v62 = vpop.f32.mrb[0].mxu1 }
 0x291   :  { %v374_v0 = vadd.f32 %v373_v61, %v199_v59  ;;  %v375_v1 = vpop.f32.mrb[1].mxu0  ;;  %v3082_v2 = vpop.f32.mrb[1].mxu1  ;;  %v417_v6 = vadd.f32 %v416_v62, %v207_v60 }
 0x292   :  { %v377_v3 = vpop.f32.mrb[2].mxu0  ;;  %v419_v5 = vpop.f32.mrb[2].mxu1  ;;  %v376_v11 = vadd.f32 %v375_v1, %v203_v63 }
 0x293   :  { %v378_v7 = vadd.f32 %v377_v3, %v199_v59  ;;  %v420_v8 = vadd.f32 %v419_v5, %v207_v60  ;;  %v379_v9 = vpop.f32.mrb[3].mxu0  ;;  %v3083_v10 = vpop.f32.mrb[3].mxu1  ;;  %v423_v13 = vmul.f32 0.17677669, %v374_v0  ;;  %v547_v5 = vld [vmem:[#allocation5 + $0x10] sm:$0xff] }
 0x294   :  { %v380_v12 = vadd.f32 %v379_v9, %v203_v63 }
 0x295   :  { %v424_v14 = vmul.f32 0.17677669, %v378_v7  ;;  %v3949_v15 = vpack.c.bf16 %v420_v8, %v417_v6  ;;  %v674_v6 = vld [vmem:[#allocation5 + $0x20] sm:$0xff]  ;;  %v548_v8 = vld [vmem:[#allocation5 + $0x18] sm:$0xff] }
 0x296   :  { %v426_v16 = vpack.c.bf16 %v380_v12, %v376_v11 }
 0x297   :  { %v425_v17 = vpack.c.bf16 %v424_v14, %v423_v13  ;;  %v799_v14 = vld [vmem:[#allocation5 + $0x38] sm:$0xff] }
 0x298   :  { %v435_v18 = vsel %vm430_vm1, %v426_v16, 0 }
 0x299   :  { %3085 = vmatpush3.bf16.xpose.msra.mxu1 %v435_v18 }
 0x29a   :  { %3090 = vmatprep.subr.bf16.mxu1 %v3752_v4 }
 0x2a0   :  { %3087 = vmatmul.mubr.msk.bf16.vlgmr.msra.gmra.mrb[4].mxu1 %vm430_vm1, %v425_v17 }
 0x2a1   :  { %3091 = vmatpush3.bf16.msra.mxu1 %v3949_v15  ;;  %3092 = vmatprep.mubr.msk.bf16.mxu1 %vm3754_vm0, %v3752_v4 }
 0x2a2   :  { %3096 = vmatprep.subr.bf16.mxu1 %v3752_v4 }
 0x373   :  { %v471_v20 = vpop.f32.mrb[4].mxu1 }
 0x374   :  { %v472_v22 = vadd.f32 %v471_v20, %v428_v19  ;;  %v3088_v23 = vpop.f32.mrb[5].mxu1 }
 0x375   :  { %v474_v24 = vpop.f32.mrb[6].mxu1 }
 0x376   :  { %v475_v25 = vadd.f32 %v474_v24, %v429_v21  ;;  %v3089_v26 = vpop.f32.mrb[7].mxu1  ;;  %v479_v27 = vsel %vm478_vm2, %v472_v22, -inf  ;;  %v675_v21 = vld [vmem:[#allocation5 + $0x28] sm:$0xff] }
 0x377   :  { %480 = vmax.xlane.f32.xlu0 %v479_v27  ;;  %v798_v27 = vld [vmem:[#allocation5 + $0x30] sm:$0xff] }
 0x378   :  { %v482_v28 = vsel %vm478_vm2, %v475_v25, -inf }
 0x379   :  { %483 = vmax.xlane.f32.xlu1 %v482_v28 }
 0x404   :  { %v481_v29 = vpop.xlane.xlu0 %480 }
 0x405   :  { %v485_v31 = vsub.f32 %v472_v22, %v481_v29 }
 0x406   :  { %v484_v32 = vpop.xlane.xlu1 %483 }
 0x407   :  { %v487_v33 = vmul.f32 1.442695, %v485_v31  ;;  %v486_v34 = vsub.f32 %v475_v25, %v484_v32 }
 0x409   :  { %3455 = vpow2.f32 %v487_v33  ;;  %v489_v35 = vmul.f32 1.442695, %v486_v34 }
 0x40b   :  { %3457 = vpow2.f32 %v489_v35 }
 0x413   :  { %v3456_v36 = vpop.eup %3455 }
 0x414   :  { %v491_v37 = vsel %vm478_vm2, %v3456_v36, 0.0 }
 0x415   :  { %v3458_v38 = vpop.eup %3457  ;;  %492 = vadd.xlane.f32.xlu0 %v491_v37 }
 0x416   :  { %v494_v39 = vsel %vm478_vm2, %v3458_v38, 0.0 }
 0x417   :  { %495 = vadd.xlane.f32.xlu1 %v494_v39 }
 0x428   :  { %550 = vrot.lane.b32.xlu1 %v425_v17, %s3755_s6 }
 0x42b   :  { %553 = vrot.lane.b32.xlu0 %v426_v16, %s3755_s6 }
 0x42c   :  { %678 = vrot.lane.b32.xlu1 %v426_v16, %s3741_s1 }
 0x42f   :  { %802 = vrot.lane.b32.xlu0 %v426_v16, %s3756_s27 }
 0x430   :  { %676 = vrot.lane.b32.xlu1 %v425_v17, %s3741_s1 }
 0x434   :  { %800 = vrot.lane.b32.xlu1 %v425_v17, %s3756_s27 }
 0x4a2   :  { %v493_v40 = vpop.xlane.xlu0 %492 }
 0x4a3   :  { %3459 = vrcp.f32 %v493_v40 }
 0x4a4   :  { %v496_v41 = vpop.xlane.xlu1 %495 }
 0x4a5   :  { %3461 = vrcp.f32 %v496_v41 }
 0x4a6   :  { %v554_v43 = vpop.permute.xlu0 %553 }
 0x4a7   :  { %v559_v52 = vsel %vm430_vm1, %v554_v43, 0 }
 0x4a8   :  { %v551_v42 = vpop.permute.xlu1 %550 }
 0x4aa   :  { %v803_v50 = vpop.permute.xlu0 %802 }
 0x4ab   :  { %v808_v56 = vsel %vm430_vm1, %v803_v50, 0 }
 0x4ac   :  { %v679_v44 = vpop.permute.xlu1 %678 }
 0x4ad   :  { %v3460_v45 = vpop.eup %3459  ;;  %v684_v46 = vsel %vm430_vm1, %v679_v44, 0 }
 0x4ae   :  { %3109 = vmatpush3.bf16.xpose.msra.mxu0 %v684_v46  ;;  %v499_v48 = vmul.f32 %v3460_v45, %v3456_v36 }
 0x4af   :  { %v3462_v47 = vpop.eup %3461  ;;  %3120 = vmatprep.subr.bf16.mxu0 %v3752_v4 }
 0x4b0   :  { %v500_v49 = vmul.f32 %v3462_v47, %v3458_v38  ;;  %v677_v53 = vpop.permute.xlu1 %676 }
 0x4b2   :  { %v501_v51 = vpack.c.bf16 %v500_v49, %v499_v48 }
 0x4b4   :  { %3093 = vmatmul.mubr.msk.bf16.vlgmr.msra.gmra.mrb[8].mxu1 %vm478_vm2, %v501_v51  ;;  %v801_v59 = vpop.permute.xlu1 %800 }
 0x4b5   :  { %3097 = vmatpush3.bf16.xpose.msra.mxu1 %v559_v52  ;;  %3111 = vmatmul.mubr.msk.bf16.vlgmr.msra.gmra.mrb[4].mxu0 %vm430_vm1, %v677_v53 }
 0x4b6   :  { %3121 = vmatpush3.bf16.xpose.msra.mxu0 %v808_v56  ;;  %3098 = vmatprep.mubr.msk.bf16.mxu1 %vm3754_vm0, %v3752_v4 }
 0x4b7   :  { %3122 = vmatprep.mubr.msk.bf16.mxu0 %vm3754_vm0, %v3752_v4  ;;  %3102 = vmatprep.subr.bf16.mxu1 %v3752_v4 }
 0x4b8   :  { %3132 = vmatprep.subr.bf16.mxu0 %v3752_v4 }
 0x4bc   :  { %3099 = vmatmul.mubr.msk.bf16.vlgmr.msra.gmra.mrb[12].mxu1 %vm430_vm1, %v551_v42 }
 0x4bd   :  { %3123 = vmatmul.mubr.msk.bf16.vlgmr.msra.gmra.mrb[8].mxu0 %vm430_vm1, %v801_v59  ;;  %3104 = vmatprep.mubr.msk.bf16.mxu1 %vm3754_vm0, %v3752_v4 }
 0x4be   :  { %3148 = vmatprep.mubr.msk.bf16.mxu0 %vm3754_vm0, %v3752_v4 }
 0x587   :  { %v3986_v60 = vpop.f32.mrb[8].mxu1 }
 0x588   :  { %v3094_v61 = vpop.f32.mrb[9].mxu1  ;;  %v720_v62 = vpop.f32.mrb[4].mxu0 }
 0x589   :  { %v3988_v63 = vpop.f32.mrb[10].mxu1  ;;  %v3112_v0 = vpop.f32.mrb[5].mxu0  ;;  %v721_v16 = vadd.f32 %v720_v62, %v674_v6 }
 0x58a   :  { %v3095_v1 = vpop.f32.mrb[11].mxu1  ;;  %v723_v2 = vpop.f32.mrb[6].mxu0 }
 0x58b   :  { %v3113_v3 = vpop.f32.mrb[7].mxu0  ;;  %v724_v25 = vadd.f32 %v723_v2, %v675_v21  ;;  %v727_v26 = vsel %vm478_vm2, %v721_v16, -inf }
 0x58d   :  { %v730_v31 = vsel %vm478_vm2, %v724_v25, -inf }
 0x58f   :  { %v595_v7 = vpop.f32.mrb[12].mxu1 }
 0x590   :  { %v596_v9 = vadd.f32 %v595_v7, %v547_v5  ;;  %v3100_v10 = vpop.f32.mrb[13].mxu1  ;;  %v844_v11 = vpop.f32.mrb[8].mxu0 }
 0x591   :  { %v598_v12 = vpop.f32.mrb[14].mxu1  ;;  %v3124_v13 = vpop.f32.mrb[9].mxu0  ;;  %v845_v29 = vadd.f32 %v844_v11, %v798_v27 }
 0x592   :  { %v599_v17 = vadd.f32 %v598_v12, %v548_v8  ;;  %v3101_v18 = vpop.f32.mrb[15].mxu1  ;;  %v847_v19 = vpop.f32.mrb[10].mxu0  ;;  %v602_v20 = vsel %vm478_vm2, %v596_v9, -inf }
 0x593   :  { %v3125_v22 = vpop.f32.mrb[11].mxu0  ;;  %603 = vmax.xlane.f32.xlu0 %v602_v20  ;;  %v848_v23 = vadd.f32 %v847_v19, %v799_v14  ;;  %v851_v32 = vsel %vm478_vm2, %v845_v29, -inf }
 0x594   :  { %v605_v24 = vsel %vm478_vm2, %v599_v17, -inf }
 0x595   :  { %606 = vmax.xlane.f32.xlu1 %v605_v24  ;;  %v854_v28 = vsel %vm478_vm2, %v848_v23, -inf }
 0x597   :  { %728 = vmax.xlane.f32.xlu0 %v727_v26 }
 0x599   :  { %855 = vmax.xlane.f32.xlu1 %v854_v28 }
 0x59b   :  { %731 = vmax.xlane.f32.xlu0 %v730_v31  ;;  %v3323_v31 = vld [vmem:[#allocation8] sm:$0xff]  }
 0x59c   :  { %3133 = vmatpush3.bf16.msra.mxu0 %v3323_v31 }
 0x59d   :  { %3134 = vmatprep.subr.bf16.mxu0 %v3752_v4 }
 0x59f   :  { %852 = vmax.xlane.f32.xlu0 %v851_v32  ;;  %v3324_v32 = vld [vmem:[#allocation8 + $0x8] sm:$0xff]  }
 0x5a0   :  { %3135 = vmatpush3.bf16.msra.mxu0 %v3324_v32 }
 0x5a1   :  { %3136 = vmatprep.subr.bf16.mxu0 %v3752_v4 }
 0x620   :  { %v604_v33 = vpop.xlane.xlu0 %603 }
 0x621   :  { %v608_v42 = vsub.f32 %v596_v9, %v604_v33  ;;  %v3325_v33 = vld [vmem:[#allocation8 + $0x10] sm:$0xff]  }
 0x622   :  { %v607_v34 = vpop.xlane.xlu1 %606  ;;  %3137 = vmatpush3.bf16.msra.mxu0 %v3325_v33 }
 0x623   :  { %v609_v43 = vsub.f32 %v599_v17, %v607_v34  ;;  %v610_v48 = vmul.f32 1.442695, %v608_v42  ;;  %3138 = vmatprep.subr.bf16.mxu0 %v3752_v4  ;;  %v3326_v34 = vld [vmem:[#allocation8 + $0x18] sm:$0xff]   ;;  %v3329_v42 = vld [vmem:[#allocation8 + $0x30] sm:$0xff]  }
 0x624   :  { %v729_v35 = vpop.xlane.xlu0 %728 }
 0x625   :  { %v733_v36 = vsub.f32 %v721_v16, %v729_v35  ;;  %v612_v49 = vmul.f32 1.442695, %v609_v43  ;;  %v3327_v35 = vld [vmem:[#allocation8 + $0x20] sm:$0xff]  }
 0x626   :  { %v856_v37 = vpop.xlane.xlu1 %855  ;;  %3139 = vmatpush3.bf16.msra.mxu0 %v3326_v34 }
 0x627   :  { %v735_v38 = vmul.f32 1.442695, %v733_v36  ;;  %v858_v39 = vsub.f32 %v848_v23, %v856_v37  ;;  %3140 = vmatprep.subr.bf16.mxu0 %v3752_v4 }
 0x628   :  { %v732_v40 = vpop.xlane.xlu0 %731 }
 0x629   :  { %3463 = vpow2.f32 %v735_v38  ;;  %v734_v41 = vsub.f32 %v724_v25, %v732_v40  ;;  %v861_v44 = vmul.f32 1.442695, %v858_v39  ;;  %v3328_v38 = vld [vmem:[#allocation8 + $0x28] sm:$0xff]  }
 0x62a   :  { %3141 = vmatpush3.bf16.msra.mxu0 %v3327_v35  ;;  %v3339_v35 = vld [vmem:[#allocation10 + $0x24] ss:$8 sps:$4 sm:$0xff]  }
 0x62b   :  { %v737_v45 = vmul.f32 1.442695, %v734_v41  ;;  %3142 = vmatprep.subr.bf16.mxu0 %v3752_v4 }
 0x62c   :  { %v853_v46 = vpop.xlane.xlu0 %852 }
 0x62d   :  { %3465 = vpow2.f32 %v737_v45  ;;  %v857_v47 = vsub.f32 %v845_v29, %v853_v46  ;;  %v3330_v45 = vld [vmem:[#allocation8 + $0x38] sm:$0xff]  }
 0x62e   :  { %3467 = vpow2.f32 %v861_v44  ;;  %3143 = vmatpush3.bf16.msra.mxu0 %v3328_v38  ;;  %v3340_v38 = vld [vmem:[#allocation10 + $0x30] ss:$8 sps:$4 sm:$0xff]  }
 0x62f   :  { %v859_v50 = vmul.f32 1.442695, %v857_v47  ;;  %3144 = vmatprep.subr.bf16.mxu0 %v3752_v4 }
 0x631   :  { %3469 = vpow2.f32 %v859_v50 }
 0x632   :  { %3471 = vpow2.f32 %v610_v48  ;;  %3145 = vmatpush3.bf16.msra.mxu0 %v3329_v42  ;;  %v3346_v42 = vld [vmem:[#allocation10 + $0x50] ss:$8 sps:$4 sm:$0xff]  }
 0x633   :  { %v3464_v51 = vpop.eup %3463  ;;  %3473 = vpow2.f32 %v612_v49  ;;  %3146 = vmatprep.subr.bf16.mxu0 %v3752_v4 }
 0x634   :  { %v739_v52 = vsel %vm478_vm2, %v3464_v51, 0.0 }
 0x635   :  { %740 = vadd.xlane.f32.xlu0 %v739_v52 }
 0x636   :  { %3147 = vmatpush3.bf16.msra.mxu0 %v3330_v45  ;;  %v3354_v45 = vld [vmem:[#allocation10 + $0x74] ss:$8 sps:$4 sm:$0xff]  }
 0x637   :  { %v3466_v53 = vpop.eup %3465 }
 0x638   :  { %v742_v56 = vsel %vm478_vm2, %v3466_v53, 0.0  ;;  %v3468_v59 = vpop.eup %3467 }
 0x639   :  { %743 = vadd.xlane.f32.xlu1 %v742_v56  ;;  %v866_v1 = vsel %vm478_vm2, %v3468_v59, 0.0 }
 0x63b   :  { %v3470_v61 = vpop.eup %3469 }
 0x63c   :  { %v3472_v62 = vpop.eup %3471  ;;  %v863_v0 = vsel %vm478_vm2, %v3470_v61, 0.0 }
 0x63d   :  { %v3474_v2 = vpop.eup %3473  ;;  %864 = vadd.xlane.f32.xlu0 %v863_v0  ;;  %867 = vadd.xlane.f32.xlu1 %v866_v1  ;;  %v614_v3 = vsel %vm478_vm2, %v3472_v62, 0.0 }
 0x63e   :  { %v617_v5 = vsel %vm478_vm2, %v3474_v2, 0.0 }
 0x641   :  { %615 = vadd.xlane.f32.xlu0 %v614_v3  ;;  %618 = vadd.xlane.f32.xlu1 %v617_v5 }
 0x652   :  { %750 = vrot.lane.b32.xlu1 %v3949_v15, %s3741_s1 }
 0x656   :  { %874 = vrot.lane.b32.xlu1 %v3949_v15, %s3756_s27 }
 0x657   :  { %626 = vrot.lane.b32.xlu0 %v3949_v15, %s3755_s6 }
 0x6c2   :  { %v741_v6 = vpop.xlane.xlu0 %740 }
 0x6c6   :  { %v744_v7 = vpop.xlane.xlu1 %743 }
 0x6ca   :  { %v865_v8 = vpop.xlane.xlu0 %864  ;;  %v868_v9 = vpop.xlane.xlu1 %867 }
 0x6ce   :  { %v616_v10 = vpop.xlane.xlu0 %615  ;;  %v619_v11 = vpop.xlane.xlu1 %618 }
 0x6cf   :  { %3475 = vrcp.f32 %v616_v10 }
 0x6d0   :  { %3477 = vrcp.f32 %v619_v11 }
 0x6d1   :  { %3479 = vrcp.f32 %v744_v7 }
 0x6d2   :  { %v627_v12 = vpop.permute.xlu0 %626  ;;  %3481 = vrcp.f32 %v741_v6  ;;  %v751_v19 = vpop.permute.xlu1 %750 }
 0x6d3   :  { %3103 = vmatpush3.bf16.msra.mxu1 %v627_v12  ;;  %3483 = vrcp.f32 %v865_v8 }
 0x6d4   :  { %3114 = vmatprep.subr.bf16.mxu1 %v3752_v4  ;;  %3485 = vrcp.f32 %v868_v9 }
 0x6d6   :  { %v875_v26 = vpop.permute.xlu1 %874 }
 0x6d9   :  { %v3476_v13 = vpop.eup %3475 }
 0x6da   :  { %v3478_v14 = vpop.eup %3477  ;;  %v622_v16 = vmul.f32 %v3476_v13, %v3472_v62  ;;  %v129_v13 = vld [vmem:[#allocation13 + $0x3] ss:$0 sm:$0xff] }
 0x6db   :  { %v623_v17 = vmul.f32 %v3478_v14, %v3474_v2  ;;  %v3480_v18 = vpop.eup %3479 }
 0x6dc   :  { %v3482_v20 = vpop.eup %3481  ;;  %v748_v21 = vmul.f32 %v3480_v18, %v3466_v53 }
 0x6dd   :  { %v624_v15 = vpack.c.bf16 %v623_v17, %v622_v16  ;;  %v747_v22 = vmul.f32 %v3482_v20, %v3464_v51  ;;  %v3484_v23 = vpop.eup %3483  ;;  %v3549_v16 = vld [vmem:[#allocation2] sm:$0xff] }
 0x6de   :  { %v3486_v25 = vpop.eup %3485  ;;  %v871_v27 = vmul.f32 %v3484_v23, %v3470_v61  ;;  %v3333_v23 = vld [vmem:[#allocation10 + $0x4] ss:$8 sps:$4 sm:$0xff]  }
 0x6df   :  { %3105 = vmatmul.mubr.msk.bf16.vlgmr.msra.gmra.mrb[16].mxu1 %vm478_vm2, %v624_v15  ;;  %v749_v24 = vpack.c.bf16 %v748_v21, %v747_v22  ;;  %v872_v28 = vmul.f32 %v3486_v25, %v3468_v59  ;;  %v3331_v22 = vld [vmem:[#allocation10] ss:$8 sps:$4 sm:$0xff]   ;;  %v3334_v25 = vld [vmem:[#allocation10 + $0x10] ss:$8 sps:$4 sm:$0xff]  }
 0x6e0   :  { %3115 = vmatpush3.bf16.msra.mxu1 %v751_v19  ;;  %3116 = vmatprep.mubr.msk.bf16.mxu1 %vm3754_vm0, %v3752_v4 }
 0x6e1   :  { %3126 = vmatprep.subr.bf16.mxu1 %v3752_v4  ;;  %v873_v29 = vpack.c.bf16 %v872_v28, %v871_v27 }
 0x6e7   :  { %3117 = vmatmul.mubr.msk.bf16.vlgmr.msra.gmra.mrb[20].mxu1 %vm478_vm2, %v749_v24  ;;  %v3336_v24 = vld [vmem:[#allocation10 + $0x14] ss:$8 sps:$4 sm:$0xff]  }
 0x6e8   :  { %3127 = vmatpush3.bf16.msra.mxu1 %v875_v26  ;;  %3128 = vmatprep.mubr.msk.bf16.mxu1 %vm3754_vm0, %v3752_v4 }
 0x6e9   :  { %1197 = vmatprep.subr.bf16.mxu1 %v3333_v23  ;;  %v133_v23 = vld [vmem:[#allocation13 + $0x6] ss:$8 sm:$0x3] }
 0x6ef   :  { %3129 = vmatmul.mubr.msk.bf16.vlgmr.msra.gmra.mrb[24].mxu1 %vm478_vm2, %v873_v29 }
 0x6f0   :  { %1229 = vmatprep.mubr.bf16.mxu1 %v3753_v30  ;;  %1198 = vmatpush1.bf16.msra.mxu1 %v3331_v22  ;;  %v3370_v22 = vld [vmem:[#allocation11 + $0x38] sm:$0xff]  }
 0x6f1   :  { %1199 = vmatprep.subr.bf16.mxu1 %v3336_v24  ;;  %v1110_v24 = vrot.slane %v133_v23, %v3939_v55 }
 0x6f4   :  { %1200 = vmatpush1.bf16.msra.mxu1 %v3334_v25  ;;  %v1114_v25 = vrot.slane %v133_v23, %v3943_v58 }
 0x6f5   :  { %1201 = vmatprep.subr.bf16.mxu1 %v3339_v35 }
 0x7b2   :  { %v666_v36 = vpop.f32.mrb[16].mxu1 }
 0x7b3   :  { %v3106_v37 = vpop.f32.mrb[17].mxu1 }
 0x7b4   :  { %v669_v39 = vpop.f32.mrb[18].mxu1  ;;  %v3342_v37 = vld [vmem:[#allocation10 + $0x34] ss:$8 sps:$4 sm:$0xff]  }
 0x7b5   :  { %v3261_v40 = vpack.i.bf16 %v669_v39, %v666_v36  ;;  %v3107_v41 = vpop.f32.mrb[19].mxu1  ;;  %v3337_v36 = vld [vmem:[#allocation10 + $0x20] ss:$8 sps:$4 sm:$0xff]   ;;  %v3345_v39 = vld [vmem:[#allocation10 + $0x44] ss:$8 sps:$4 sm:$0xff]  }
 0x7b6   :  { %1202 = vmatpush1.bf16.msra.mxu1 %v3337_v36  ;;  %v3348_v41 = vld [vmem:[#allocation10 + $0x54] ss:$8 sps:$4 sm:$0xff]  }
 0x7b7   :  { %3262 = vrot.lane.b32.xlu1 %v3261_v40, %s3756_s27  ;;  %1203 = vmatprep.subr.bf16.mxu1 %v3342_v37  ;;  %v3343_v40 = vld [vmem:[#allocation10 + $0x40] ss:$8 sps:$4 sm:$0xff]  }
 0x7ba   :  { %v790_v43 = vpop.f32.mrb[20].mxu1  ;;  %1204 = vmatpush1.bf16.msra.mxu1 %v3340_v38 }
 0x7bb   :  { %v3118_v44 = vpop.f32.mrb[21].mxu1  ;;  %1205 = vmatprep.subr.bf16.mxu1 %v3345_v39 }
 0x7bc   :  { %v793_v46 = vpop.f32.mrb[22].mxu1  ;;  %v3349_v44 = vld [vmem:[#allocation10 + $0x60] ss:$8 sps:$4 sm:$0xff]  }
 0x7bd   :  { %v3266_v47 = vpack.i.bf16 %v793_v46, %v790_v43  ;;  %v3119_v48 = vpop.f32.mrb[23].mxu1  ;;  %v3351_v43 = vld [vmem:[#allocation10 + $0x64] ss:$8 sps:$4 sm:$0xff]   ;;  %v3352_v46 = vld [vmem:[#allocation10 + $0x70] ss:$8 sps:$4 sm:$0xff]  }
 0x7be   :  { %1206 = vmatpush1.bf16.msra.mxu1 %v3343_v40 }
 0x7bf   :  { %3267 = vrot.lane.b32.xlu0 %v3266_v47, %s3741_s1  ;;  %1207 = vmatprep.subr.bf16.mxu1 %v3348_v41 }
 0x7c2   :  { %v914_v49 = vpop.f32.mrb[24].mxu1  ;;  %1208 = vmatpush1.bf16.msra.mxu1 %v3346_v42 }
 0x7c3   :  { %v3130_v50 = vpop.f32.mrb[25].mxu1  ;;  %1209 = vmatprep.subr.bf16.mxu1 %v3351_v43 }
 0x7c4   :  { %v917_v51 = vpop.f32.mrb[26].mxu1 }
 0x7c5   :  { %v3271_v52 = vpack.i.bf16 %v917_v51, %v914_v49  ;;  %v3131_v53 = vpop.f32.mrb[27].mxu1 }
 0x7c6   :  { %1210 = vmatpush1.bf16.msra.mxu1 %v3349_v44 }
 0x7c7   :  { %3272 = vrot.lane.b32.xlu1 %v3271_v52, %s3755_s6  ;;  %1211 = vmatprep.subr.bf16.mxu1 %v3354_v45 }
 0x7ca   :  { %1212 = vmatpush1.bf16.msra.mxu1 %v3352_v46 }
 0x829   :  { %v3263_v56 = vpop.permute.xlu1 %3262 }
 0x82a   :  { %v3265_v61 = vunpack.i.h.bf16 %v3263_v56  ;;  %v3264_v62 = vunpack.i.l.bf16 %v3263_v56 }
 0x82c   :  { %v946_v3 = vsel %vm430_vm1, %v3988_v63, %v3265_v61  ;;  %v945_v5 = vsel %vm430_vm1, %v3986_v60, %v3264_v62  ;;  %v3550_v60 = vld [vmem:[#allocation2 + $0x8] sm:$0xff] }
 0x831   :  { %v3268_v59 = vpop.permute.xlu0 %3267 }
 0x832   :  { %v3270_v0 = vunpack.i.h.bf16 %v3268_v59  ;;  %v3269_v1 = vunpack.i.l.bf16 %v3268_v59  ;;  %v130_v59 = vld [vmem:[#allocation13 + $0x4] ss:$0 sm:$0xff] }
 0x834   :  { %v949_v8 = vsel %vm947_vm3, %v946_v3, %v3270_v0  ;;  %v948_v9 = vsel %vm947_vm3, %v945_v5, %v3269_v1  ;;  %v131_v1 = vld [vmem:[#allocation13 + $0x5] ss:$0 sm:$0xff] }
 0x839   :  { %v3273_v2 = vpop.permute.xlu1 %3272 }
 0x83a   :  { %v3275_v6 = vunpack.i.h.bf16 %v3273_v2  ;;  %v3274_v7 = vunpack.i.l.bf16 %v3273_v2 }
 0x83c   :  { %v952_v10 = vsel %vm950_vm4, %v949_v8, %v3275_v6  ;;  %v951_v11 = vsel %vm950_vm4, %v948_v9, %v3274_v7  ;;  %v3355_v7 = vld [vmem:[#allocation11 + $0x40] sm:$0xff]   ;;  %v3357_v9 = vld [vmem:[#allocation11 + $0x48] sm:$0xff]  }
 0x83d   :  { %v953_v12 = vpack.c.bf16 %v952_v10, %v951_v11  ;;  %v3356_v8 = vld [vmem:[#allocation11] sm:$0xff]   ;;  %2986 = vmatprep.subr.bf16.mxu0 %v3355_v7  ;;  %v3358_v10 = vld [vmem:[#allocation11 + $0x8] sm:$0xff]   ;;  %v3359_v11 = vld [vmem:[#allocation11 + $0x50] sm:$0xff]  }
 0x83f   :  { %3149 = vmatmul.mubr.bf16.vlgmr.msra.gmra.mrb[12].mxu0 %v953_v12  ;;  %v3360_v12 = vld [vmem:[#allocation11 + $0x10] sm:$0xff]  }
 0x840   :  { %2987 = vmatpush3.bf16.msra.mxu0 %v3356_v8 }
 0x841   :  { %2988 = vmatprep.subr.bf16.mxu0 %v3357_v9 }
 0x844   :  { %2989 = vmatpush3.bf16.msra.mxu0 %v3358_v10 }
 0x845   :  { %2990 = vmatprep.subr.bf16.mxu0 %v3359_v11 }
 0x848   :  { %2991 = vmatpush3.bf16.msra.mxu0 %v3360_v12 }
 0x912   :  { %v1052_v14 = vpop.f32.mrb[12].mxu0 }
 0x913   :  { %v1059_v17 = vadd.f32 %v3549_v16, %v1052_v14  ;;  %v3150_v63 = vpop.f32.mrb[13].mxu0  ;;  %v3362_v14 = vld [vmem:[#allocation11 + $0x18] sm:$0xff]   ;;  %v3363_v16 = vld [vmem:[#allocation11 + $0x60] sm:$0xff]  }
 0x914   :  { %v1055_v15 = vpop.f32.mrb[14].mxu0  ;;  %v3365_v63 = vld [vmem:[#allocation11 + $0x68] sm:$0xff]  }
 0x915   :  { %v4036_v18 = vadd.f32 %v1059_v17, %v129_v13  ;;  %v1060_v19 = vadd.f32 %v3550_v60, %v1055_v15  ;;  %v3151_v20 = vpop.f32.mrb[15].mxu0  ;;  %v3364_v17 = vld [vmem:[#allocation11 + $0x20] sm:$0xff]   ;;  %v3366_v15 = vld [vmem:[#allocation11 + $0x28] sm:$0xff]   ;;  %v3367_v60 = vld [vmem:[#allocation11 + $0x70] sm:$0xff]  }
 0x916   :  { %v3369_v20 = vld [vmem:[#allocation11 + $0x78] sm:$0xff]  }
 0x917   :  { %v4038_v21 = vadd.f32 %v1060_v19, %v129_v13  ;;  %1063 = vadd.xlane.f32.xlu0 %v4036_v18  ;;  %v3361_v13 = vld [vmem:[#allocation11 + $0x58] sm:$0xff]   ;;  %v3368_v19 = vld [vmem:[#allocation11 + $0x30] sm:$0xff]  }
 0x918   :  { %2992 = vmatprep.subr.bf16.mxu0 %v3361_v13 }
 0x919   :  { %1065 = vadd.xlane.f32.xlu1 %v4038_v21  ;;  %2993 = vmatpush3.bf16.msra.mxu0 %v3362_v14 }
 0x91a   :  { %2994 = vmatprep.subr.bf16.mxu0 %v3363_v16 }
 0x91d   :  { %2995 = vmatpush3.bf16.msra.mxu0 %v3364_v17 }
 0x91e   :  { %2996 = vmatprep.subr.bf16.mxu0 %v3365_v63 }
 0x921   :  { %2997 = vmatpush3.bf16.msra.mxu0 %v3366_v15 }
 0x922   :  { %2998 = vmatprep.subr.bf16.mxu0 %v3367_v60 }
 0x925   :  { %2999 = vmatpush3.bf16.msra.mxu0 %v3368_v19 }
 0x926   :  { %3000 = vmatprep.subr.bf16.mxu0 %v3369_v20  ;;  %v134_v20 = vld [vmem:[#allocation13 + $0x7] ss:$0 sm:$0xff] }
 0x929   :  { %3001 = vmatpush3.bf16.msra.mxu0 %v3370_v22 }
 0x92a   :  { %3152 = vmatprep.subr.bf16.mxu0 %v3752_v4 }
 0x9a4   :  { %v1064_v26 = vpop.xlane.xlu0 %1063 }
 0x9a5   :  { %v1067_v27 = vmul.f32 0.0078125, %v1064_v26 }
 0x9a6   :  { %v1066_v28 = vpop.xlane.xlu1 %1065 }
 0x9a7   :  { %v1069_v29 = vsub.f32 %v4036_v18, %v1067_v27  ;;  %v1068_v31 = vmul.f32 0.0078125, %v1066_v28 }
 0x9a9   :  { %v1070_v32 = vsub.f32 %v4038_v21, %v1068_v31  ;;  %v1071_v33 = vmul.f32 %v1069_v29, %v1069_v29 }
 0x9ab   :  { %1073 = vadd.xlane.f32.xlu0 %v1071_v33  ;;  %v1072_v34 = vmul.f32 %v1070_v32, %v1070_v32 }
 0x9af   :  { %1075 = vadd.xlane.f32.xlu0 %v1072_v34 }
 0xa38   :  { %v1074_v47 = vpop.xlane.xlu0 %1073 }
 0xa39   :  { %v1077_v48 = vmul.f32 0.0078125, %v1074_v47 }
 0xa3b   :  { %v1079_v49 = vadd.f32 1e-05, %v1077_v48 }
 0xa3c   :  { %v1076_v50 = vpop.xlane.xlu0 %1075 }
 0xa3d   :  { %3487 = vrsqrt.f32 %v1079_v49  ;;  %v1078_v51 = vmul.f32 0.0078125, %v1076_v50 }
 0xa3f   :  { %v1080_v52 = vadd.f32 1e-05, %v1078_v51 }
 0xa41   :  { %3489 = vrsqrt.f32 %v1080_v52 }
 0xa47   :  { %v3488_v53 = vpop.eup %3487 }
 0xa48   :  { %v1083_v56 = vmul.f32 %v3488_v53, %v1069_v29 }
 0xa4a   :  { %v1085_v0 = vmul.f32 %v1083_v56, %v130_v59 }
 0xa4b   :  { %v3490_v61 = vpop.eup %3489 }
 0xa4c   :  { %v1084_v62 = vmul.f32 %v3490_v61, %v1070_v32  ;;  %v1087_v3 = vadd.f32 %v1085_v0, %v131_v1 }
 0xa4e   :  { %v1086_v2 = vmul.f32 %v1084_v62, %v130_v59 }
 0xa50   :  { %v1088_v5 = vadd.f32 %v1086_v2, %v131_v1 }
 0xa52   :  { %v1089_v6 = vpack.c.bf16 %v1088_v5, %v1087_v3 }
 0xa54   :  { %1230 = vmatmul.mubr.bf16.vlgmr.msra.gmra.mrb[28].mxu1 %v1089_v6 }
 0xa55   :  { %1698 = vmatprep.mubr.bf16.mxu1 %v3753_v30 }
 0xb27   :  { %v1231_v26 = vpop.f32.mrb[28].mxu1 }
 0xb28   :  { %v1232_v27 = vadd.f32 %v1231_v26, %v1110_v24  ;;  %v1233_v28 = vpop.f32.mrb[29].mxu1 }
 0xb29   :  { %v1234_v29 = vadd.f32 %v1233_v28, %v1114_v25  ;;  %v1235_v31 = vpop.f32.mrb[30].mxu1  ;;  %v3373_v28 = vld [vmem:[#allocation7 + $0xc4] ss:$12 sps:$4 sm:$0xff]  }
 0xb2a   :  { %v1240_v32 = vmul.f32 %v1232_v27, %v1232_v27  ;;  %v1236_v33 = vadd.f32 %v1235_v31, %v1110_v24  ;;  %v1237_v34 = vpop.f32.mrb[31].mxu1  ;;  %v3377_v31 = vld [vmem:[#allocation7 + $0xdc] ss:$12 sps:$4 sm:$0xff]   ;;  %1666 = vmatprep.subr.bf16.mxu1 %v3373_v28 }
 0xb2b   :  { %v1241_v35 = vmul.f32 %v1234_v29, %v1234_v29  ;;  %v1238_v36 = vadd.f32 %v1237_v34, %v1114_v25 }
 0xb2c   :  { %v1244_v37 = vmul.f32 %v1240_v32, %v1232_v27  ;;  %v1242_v38 = vmul.f32 %v1236_v33, %v1236_v33  ;;  %v3378_v32 = vld [vmem:[#allocation7 + $0xe0] ss:$12 sps:$4 sm:$0xff]  }
 0xb2d   :  { %v1245_v39 = vmul.f32 %v1241_v35, %v1234_v29  ;;  %v1243_v40 = vmul.f32 %v1238_v36, %v1238_v36 }
 0xb2e   :  { %v1248_v41 = vmul.f32 0.044715, %v1244_v37  ;;  %v1246_v42 = vmul.f32 %v1242_v38, %v1236_v33 }
 0xb2f   :  { %v1249_v43 = vmul.f32 0.044715, %v1245_v39  ;;  %v1247_v44 = vmul.f32 %v1243_v40, %v1238_v36  ;;  %v3381_v40 = vld [vmem:[#allocation7 + $0xf4] ss:$12 sps:$4 sm:$0xff]  }
 0xb30   :  { %v1252_v45 = vadd.f32 %v1248_v41, %v1232_v27  ;;  %v1250_v46 = vmul.f32 0.044715, %v1246_v42  ;;  %v3379_v41 = vld [vmem:[#allocation7 + $0xf0] ss:$12 sps:$4 sm:$0xff]   ;;  %v3382_v42 = vld [vmem:[#allocation7 + $0xf8] ss:$12 sps:$4 sm:$0xff]  }
 0xb31   :  { %v1253_v47 = vadd.f32 %v1249_v43, %v1234_v29  ;;  %v1251_v48 = vmul.f32 0.044715, %v1247_v44  ;;  %v3385_v43 = vld [vmem:[#allocation7 + $0x10c] ss:$12 sps:$4 sm:$0xff]   ;;  %v3383_v44 = vld [vmem:[#allocation7 + $0x108] ss:$12 sps:$4 sm:$0xff]  }
 0xb32   :  { %v1256_v49 = vmul.f32 0.7978846, %v1252_v45  ;;  %v1254_v50 = vadd.f32 %v1250_v46, %v1236_v33  ;;  %v3386_v45 = vld [vmem:[#allocation7 + $0x110] ss:$12 sps:$4 sm:$0xff]  }
 0xb33   :  { %v1257_v51 = vmul.f32 0.7978846, %v1253_v47  ;;  %v1255_v52 = vadd.f32 %v1251_v48, %v1238_v36  ;;  %v3389_v46 = vld [vmem:[#allocation7 + $0x124] ss:$12 sps:$4 sm:$0xff]   ;;  %v3387_v47 = vld [vmem:[#allocation7 + $0x120] ss:$12 sps:$4 sm:$0xff]  }
 0xb34   :  { %3491 = vtanh.f32 %v1256_v49  ;;  %v1258_v53 = vmul.f32 0.7978846, %v1254_v50  ;;  %v3390_v48 = vld [vmem:[#allocation7 + $0x128] ss:$12 sps:$4 sm:$0xff]   ;;  %v3391_v50 = vld [vmem:[#allocation7 + $0x138] ss:$12 sps:$4 sm:$0xff]  }
 0xb35   :  { %3493 = vtanh.f32 %v1257_v51  ;;  %v1259_v56 = vmul.f32 0.7978846, %v1255_v52  ;;  %v3393_v49 = vld [vmem:[#allocation7 + $0x13c] ss:$12 sps:$4 sm:$0xff]   ;;  %v3394_v51 = vld [vmem:[#allocation7 + $0x140] ss:$12 sps:$4 sm:$0xff]  }
 0xb36   :  { %3495 = vtanh.f32 %v1258_v53  ;;  %v3397_v52 = vld [vmem:[#allocation7 + $0x154] ss:$12 sps:$4 sm:$0xff]   ;;  %v3395_v53 = vld [vmem:[#allocation7 + $0x150] ss:$12 sps:$4 sm:$0xff]  }
 0xb37   :  { %3497 = vtanh.f32 %v1259_v56  ;;  %v3398_v56 = vld [vmem:[#allocation7 + $0x158] ss:$12 sps:$4 sm:$0xff]  }
 0xb3e   :  { %v3492_v59 = vpop.eup %3491 }
 0xb3f   :  { %v3494_v61 = vpop.eup %3493  ;;  %v1264_v62 = vadd.f32 1.0, %v3492_v59  ;;  %v3401_v59 = vld [vmem:[#allocation7 + $0x16c] ss:$12 sps:$4 sm:$0xff]  }
 0xb40   :  { %v3496_v0 = vpop.eup %3495  ;;  %v1265_v1 = vadd.f32 1.0, %v3494_v61  ;;  %v3399_v61 = vld [vmem:[#allocation7 + $0x168] ss:$12 sps:$4 sm:$0xff]  }
 0xb41   :  { %v3498_v2 = vpop.eup %3497  ;;  %v1268_v3 = vmul.f32 0.5, %v1264_v62  ;;  %v1266_v5 = vadd.f32 1.0, %v3496_v0  ;;  %v3402_v62 = vld [vmem:[#allocation7 + $0x170] ss:$12 sps:$4 sm:$0xff]  }
 0xb42   :  { %v1267_v6 = vadd.f32 1.0, %v3498_v2  ;;  %v1269_v7 = vmul.f32 0.5, %v1265_v1 }
 0xb43   :  { %v1270_v8 = vmul.f32 0.5, %v1266_v5  ;;  %v1272_v10 = vmul.f32 %v1268_v3, %v1232_v27  ;;  %v3371_v27 = vld [vmem:[#allocation7 + $0xc0] ss:$12 sps:$4 sm:$0xff]  }
 0xb44   :  { %v1271_v9 = vmul.f32 0.5, %v1267_v6  ;;  %v1273_v12 = vmul.f32 %v1269_v7, %v1234_v29  ;;  %v3374_v29 = vld [vmem:[#allocation7 + $0xc8] ss:$12 sps:$4 sm:$0xff]   ;;  %1667 = vmatpush1.bf16.msra.mxu1 %v3371_v27 }
 0xb45   :  { %v1274_v11 = vmul.f32 %v1270_v8, %v1236_v33  ;;  %1668 = vmatprep.subr.bf16.mxu1 %v3377_v31  ;;  %v1452_v8 = vld [vmem:[#allocation13 + $0x18] ss:$0 sm:$0xff] }
 0xb46   :  { %v1275_v13 = vmul.f32 %v1271_v9, %v1238_v36 }
 0xb47   :  { %v1276_v14 = vpack.c.bf16 %v1274_v11, %v1272_v10 }
 0xb48   :  { %v1277_v16 = vpack.c.bf16 %v1275_v13, %v1273_v12  ;;  %v1453_v13 = vld [vmem:[#allocation13 + $0x19] ss:$0 sm:$0xff] }
 0xb4a   :  { %1438 = vmatprep.mubr.bf16.mxu0 %v1277_v16 }
 0xb4b   :  { %1439 = vmatmul.mubr.bf16.vlgmr.msra.gmra.mrb[16].mxu0 %v1276_v14 }
 0xb4c   :  { %3168 = vmatprep.mubr.msk.bf16.mxu0 %vm3754_vm0, %v3752_v4  ;;  %3153 = vmatpush3.bf16.msra.mxu0 %v3374_v29 }
 0xb4d   :  { %3154 = vmatprep.subr.bf16.mxu0 %v3752_v4 }
 0xb50   :  { %3155 = vmatpush3.bf16.msra.mxu0 %v3378_v32 }
 0xb51   :  { %3156 = vmatprep.subr.bf16.mxu0 %v3752_v4 }
 0xb54   :  { %3157 = vmatpush3.bf16.msra.mxu0 %v3382_v42 }
 0xb55   :  { %3158 = vmatprep.subr.bf16.mxu0 %v3752_v4 }
 0xb58   :  { %3159 = vmatpush3.bf16.msra.mxu0 %v3386_v45 }
 0xb59   :  { %3160 = vmatprep.subr.bf16.mxu0 %v3752_v4 }
 0xb5c   :  { %3161 = vmatpush3.bf16.msra.mxu0 %v3390_v48 }
 0xb5d   :  { %3162 = vmatprep.subr.bf16.mxu0 %v3752_v4 }
 0xb60   :  { %3163 = vmatpush3.bf16.msra.mxu0 %v3394_v51 }
 0xb61   :  { %3164 = vmatprep.subr.bf16.mxu0 %v3752_v4 }
 0xb64   :  { %3165 = vmatpush3.bf16.msra.mxu0 %v3398_v56 }
 0xb65   :  { %3166 = vmatprep.subr.bf16.mxu0 %v3752_v4 }
 0xb68   :  { %3167 = vmatpush3.bf16.msra.mxu0 %v3402_v62 }
 0xb69   :  { %3196 = vmatprep.subr.bf16.mxu0 %v3752_v4 }
 0xc1e   :  { %v3002_v17 = vpop.f32.mrb[16].mxu0 }
 0xc1f   :  { %v3003_v63 = vpop.f32.mrb[17].mxu0 }
 0xc20   :  { %v3004_v15 = vadd.f32 %v3003_v63, %v3002_v17  ;;  %v3005_v60 = vpop.f32.mrb[18].mxu0 }
 0xc21   :  { %v3006_v19 = vpop.f32.mrb[19].mxu0 }
 0xc22   :  { %v1447_v22 = vadd.f32 %v3004_v15, %v4036_v18  ;;  %v3007_v23 = vadd.f32 %v3006_v19, %v3005_v60  ;;  %v3375_v18 = vld [vmem:[#allocation7 + $0xd8] ss:$12 sps:$4 sm:$0xff]  }
 0xc23   :  { %1669 = vmatpush1.bf16.msra.mxu1 %v3375_v18  ;;  %v1455_v15 = vld [vmem:[#allocation13 + $0x1a] ss:$8 sm:$0x7] }
 0xc24   :  { %v1448_v24 = vadd.f32 %v3007_v23, %v4038_v21  ;;  %v4052_v25 = vadd.f32 %v1447_v22, %v134_v20  ;;  %1670 = vmatprep.subr.bf16.mxu1 %v3381_v40  ;;  %v1526_v60 = vrot.slane %v1455_v15, %v3939_v55  ;;  %v1534_v19 = vrot.slane %v1455_v15, %v206_v57 }
 0xc25   :  { %v1530_v23 = vrot.slane %v1455_v15, %v3943_v58 }
 0xc26   :  { %1462 = vadd.xlane.f32.xlu0 %v4052_v25  ;;  %v4055_v26 = vadd.f32 %v1448_v24, %v134_v20 }
 0xc27   :  { %1671 = vmatpush1.bf16.msra.mxu1 %v3379_v41  ;;  %v1755_v41 = vld [vmem:[#allocation5] sm:$0xff] }
 0xc28   :  { %1464 = vadd.xlane.f32.xlu1 %v4055_v26  ;;  %1672 = vmatprep.subr.bf16.mxu1 %v3385_v43  ;;  %v1756_v43 = vld [vmem:[#allocation5 + $0x8] sm:$0xff] }
 0xc2b   :  { %1673 = vmatpush1.bf16.msra.mxu1 %v3383_v44 }
 0xc2c   :  { %1674 = vmatprep.subr.bf16.mxu1 %v3389_v46 }
 0xc2f   :  { %1675 = vmatpush1.bf16.msra.mxu1 %v3387_v47 }
 0xc30   :  { %1676 = vmatprep.subr.bf16.mxu1 %v3393_v49 }
 0xc33   :  { %1677 = vmatpush1.bf16.msra.mxu1 %v3391_v50 }
 0xc34   :  { %1678 = vmatprep.subr.bf16.mxu1 %v3397_v52 }
 0xc37   :  { %1679 = vmatpush1.bf16.msra.mxu1 %v3395_v53 }
 0xc38   :  { %1680 = vmatprep.subr.bf16.mxu1 %v3401_v59 }
 0xc3b   :  { %1681 = vmatpush1.bf16.msra.mxu1 %v3399_v61 }
 0xc3c   :  { %3172 = vmatprep.subr.bf16.mxu1 %v3752_v4 }
 0xcb3   :  { %v1463_v21 = vpop.xlane.xlu0 %1462 }
 0xcb4   :  { %v1466_v33 = vmul.f32 0.0078125, %v1463_v21 }
 0xcb5   :  { %v1465_v34 = vpop.xlane.xlu1 %1464 }
 0xcb6   :  { %v1468_v35 = vsub.f32 %v4052_v25, %v1466_v33  ;;  %v1467_v36 = vmul.f32 0.0078125, %v1465_v34 }
 0xcb8   :  { %v1469_v37 = vsub.f32 %v4055_v26, %v1467_v36  ;;  %v1470_v38 = vmul.f32 %v1468_v35, %v1468_v35 }
 0xcba   :  { %1472 = vadd.xlane.f32.xlu0 %v1470_v38  ;;  %v1471_v39 = vmul.f32 %v1469_v37, %v1469_v37 }
 0xcbc   :  { %1474 = vadd.xlane.f32.xlu1 %v1471_v39 }
 0xd47   :  { %v1473_v0 = vpop.xlane.xlu0 %1472 }
 0xd48   :  { %v1476_v1 = vmul.f32 0.0078125, %v1473_v0 }
 0xd49   :  { %v1475_v2 = vpop.xlane.xlu1 %1474 }
 0xd4a   :  { %v1478_v3 = vadd.f32 1e-05, %v1476_v1  ;;  %v1477_v5 = vmul.f32 0.0078125, %v1475_v2 }
 0xd4c   :  { %3499 = vrsqrt.f32 %v1478_v3  ;;  %v1479_v6 = vadd.f32 1e-05, %v1477_v5 }
 0xd4e   :  { %3501 = vrsqrt.f32 %v1479_v6 }
 0xd56   :  { %v3500_v7 = vpop.eup %3499 }
 0xd57   :  { %v1482_v9 = vmul.f32 %v3500_v7, %v1468_v35 }
 0xd58   :  { %v3502_v10 = vpop.eup %3501 }
 0xd59   :  { %v1483_v11 = vmul.f32 %v3502_v10, %v1469_v37  ;;  %v1484_v12 = vmul.f32 %v1482_v9, %v1452_v8 }
 0xd5b   :  { %v1485_v14 = vmul.f32 %v1483_v11, %v1452_v8  ;;  %v1486_v16 = vadd.f32 %v1484_v12, %v1453_v13 }
 0xd5d   :  { %v1487_v17 = vadd.f32 %v1485_v14, %v1453_v13 }
 0xd5f   :  { %v1488_v63 = vpack.c.bf16 %v1487_v17, %v1486_v16 }
 0xd61   :  { %1699 = vmatmul.mubr.bf16.vlgmr.msra.gmra.mrb[32].mxu1 %v1488_v63  ;;  %3169 = vmatmul.mubr.bf16.vlgmr.msra.gmra.mrb[20].mxu0 %v1488_v63 }
 0xd62   :  { %3174 = vmatprep.mubr.msk.bf16.mxu1 %vm3754_vm0, %v3752_v4  ;;  %3198 = vmatprep.mubr.msk.bf16.mxu0 %vm3754_vm0, %v3752_v4 }
 0xe34   :  { %v1700_v20 = vpop.f32.mrb[32].mxu1  ;;  %v1743_v22 = vpop.f32.mrb[20].mxu0 }
 0xe35   :  { %v1701_v24 = vadd.f32 %v1700_v20, %v1526_v60  ;;  %v1702_v27 = vpop.f32.mrb[33].mxu1  ;;  %v3170_v28 = vpop.f32.mrb[21].mxu0  ;;  %v1744_v32 = vadd.f32 %v1743_v22, %v1534_v19 }
 0xe36   :  { %v1704_v29 = vpop.f32.mrb[34].mxu1  ;;  %v1746_v31 = vpop.f32.mrb[22].mxu0  ;;  %v1703_v35 = vadd.f32 %v1702_v27, %v1530_v23 }
 0xe37   :  { %v1705_v18 = vadd.f32 %v1704_v29, %v1526_v60  ;;  %v1747_v21 = vadd.f32 %v1746_v31, %v1534_v19  ;;  %v1706_v33 = vpop.f32.mrb[35].mxu1  ;;  %v3171_v34 = vpop.f32.mrb[23].mxu0  ;;  %v1750_v37 = vmul.f32 0.17677669, %v1701_v24  ;;  %v1871_v31 = vld [vmem:[#allocation5 + $0x10] sm:$0xff] }
 0xe38   :  { %v1707_v36 = vadd.f32 %v1706_v33, %v1530_v23 }
 0xe39   :  { %v1751_v38 = vmul.f32 0.17677669, %v1705_v18  ;;  %v4077_v54 = vpack.c.bf16 %v1747_v21, %v1744_v32  ;;  %v1997_v32 = vld [vmem:[#allocation5 + $0x20] sm:$0xff]  ;;  %v1872_v21 = vld [vmem:[#allocation5 + $0x18] sm:$0xff] }
 0xe3a   :  { %v1753_v57 = vpack.c.bf16 %v1707_v36, %v1703_v35 }
 0xe3b   :  { %v1752_v39 = vpack.c.bf16 %v1751_v38, %v1750_v37  ;;  %v2121_v38 = vld [vmem:[#allocation5 + $0x38] sm:$0xff] }
 0xe3c   :  { %v1761_v40 = vsel %vm430_vm1, %v1753_v57, 0 }
 0xe3d   :  { %3173 = vmatpush3.bf16.xpose.msra.mxu1 %v1761_v40 }
 0xe3e   :  { %3178 = vmatprep.subr.bf16.mxu1 %v3752_v4 }
 0xe44   :  { %3175 = vmatmul.mubr.msk.bf16.vlgmr.msra.gmra.mrb[36].mxu1 %vm430_vm1, %v1752_v39 }
 0xe45   :  { %3179 = vmatpush3.bf16.msra.mxu1 %v4077_v54  ;;  %3180 = vmatprep.mubr.msk.bf16.mxu1 %vm3754_vm0, %v3752_v4 }
 0xe46   :  { %3184 = vmatprep.subr.bf16.mxu1 %v3752_v4 }
 0xf17   :  { %v1797_v42 = vpop.f32.mrb[36].mxu1 }
 0xf18   :  { %v1798_v44 = vadd.f32 %v1797_v42, %v1755_v41  ;;  %v3176_v45 = vpop.f32.mrb[37].mxu1 }
 0xf19   :  { %v1800_v46 = vpop.f32.mrb[38].mxu1 }
 0xf1a   :  { %v1801_v47 = vadd.f32 %v1800_v46, %v1756_v43  ;;  %v3177_v48 = vpop.f32.mrb[39].mxu1  ;;  %v1804_v49 = vsel %vm478_vm2, %v1798_v44, -inf  ;;  %v1998_v43 = vld [vmem:[#allocation5 + $0x28] sm:$0xff] }
 0xf1b   :  { %1805 = vmax.xlane.f32.xlu0 %v1804_v49  ;;  %v2120_v49 = vld [vmem:[#allocation5 + $0x30] sm:$0xff] }
 0xf1c   :  { %v1807_v50 = vsel %vm478_vm2, %v1801_v47, -inf }
 0xf1d   :  { %1808 = vmax.xlane.f32.xlu1 %v1807_v50 }
 0xfa8   :  { %v1806_v51 = vpop.xlane.xlu0 %1805 }
 0xfa9   :  { %v1810_v52 = vsub.f32 %v1798_v44, %v1806_v51 }
 0xfaa   :  { %v1809_v53 = vpop.xlane.xlu1 %1808 }
 0xfab   :  { %v1812_v56 = vmul.f32 1.442695, %v1810_v52  ;;  %v1811_v59 = vsub.f32 %v1801_v47, %v1809_v53 }
 0xfad   :  { %3503 = vpow2.f32 %v1812_v56  ;;  %v1814_v61 = vmul.f32 1.442695, %v1811_v59 }
 0xfaf   :  { %3505 = vpow2.f32 %v1814_v61 }
 0xfb7   :  { %v3504_v62 = vpop.eup %3503 }
 0xfb8   :  { %v1816_v0 = vsel %vm478_vm2, %v3504_v62, 0.0 }
 0xfb9   :  { %v3506_v1 = vpop.eup %3505  ;;  %1817 = vadd.xlane.f32.xlu0 %v1816_v0 }
 0xfba   :  { %v1819_v2 = vsel %vm478_vm2, %v3506_v1, 0.0 }
 0xfbb   :  { %1820 = vadd.xlane.f32.xlu1 %v1819_v2 }
 0xfcc   :  { %1874 = vrot.lane.b32.xlu1 %v1752_v39, %s3755_s6 }
 0xfcf   :  { %1877 = vrot.lane.b32.xlu0 %v1753_v57, %s3755_s6 }
 0xfd0   :  { %2001 = vrot.lane.b32.xlu1 %v1753_v57, %s3741_s1 }
 0xfd3   :  { %2124 = vrot.lane.b32.xlu0 %v1753_v57, %s3756_s27 }
 0xfd4   :  { %1999 = vrot.lane.b32.xlu1 %v1752_v39, %s3741_s1 }
 0xfd8   :  { %2122 = vrot.lane.b32.xlu1 %v1752_v39, %s3756_s27 }
0x1046   :  { %v1818_v3 = vpop.xlane.xlu0 %1817 }
0x1047   :  { %3507 = vrcp.f32 %v1818_v3 }
0x1048   :  { %v1821_v5 = vpop.xlane.xlu1 %1820 }
0x1049   :  { %3509 = vrcp.f32 %v1821_v5 }
0x104a   :  { %v1878_v7 = vpop.permute.xlu0 %1877 }
0x104b   :  { %v1883_v17 = vsel %vm430_vm1, %v1878_v7, 0 }
0x104c   :  { %v1875_v6 = vpop.permute.xlu1 %1874 }
0x104e   :  { %v2125_v14 = vpop.permute.xlu0 %2124 }
0x104f   :  { %v2130_v15 = vsel %vm430_vm1, %v2125_v14, 0 }
0x1050   :  { %v2002_v8 = vpop.permute.xlu1 %2001 }
0x1051   :  { %v3508_v9 = vpop.eup %3507  ;;  %v2007_v10 = vsel %vm430_vm1, %v2002_v8, 0 }
0x1052   :  { %3197 = vmatpush3.bf16.xpose.msra.mxu0 %v2007_v10  ;;  %v1824_v12 = vmul.f32 %v3508_v9, %v3504_v62 }
0x1053   :  { %v3510_v11 = vpop.eup %3509  ;;  %3208 = vmatprep.subr.bf16.mxu0 %v3752_v4 }
0x1054   :  { %v1825_v13 = vmul.f32 %v3510_v11, %v3506_v1  ;;  %v2000_v63 = vpop.permute.xlu1 %1999 }
0x1056   :  { %v1826_v16 = vpack.c.bf16 %v1825_v13, %v1824_v12 }
0x1058   :  { %3181 = vmatmul.mubr.msk.bf16.vlgmr.msra.gmra.mrb[40].mxu1 %vm478_vm2, %v1826_v16  ;;  %v2123_v60 = vpop.permute.xlu1 %2122 }
0x1059   :  { %3185 = vmatpush3.bf16.xpose.msra.mxu1 %v1883_v17  ;;  %3199 = vmatmul.mubr.msk.bf16.vlgmr.msra.gmra.mrb[24].mxu0 %vm430_vm1, %v2000_v63 }
0x105a   :  { %3209 = vmatpush3.bf16.xpose.msra.mxu0 %v2130_v15  ;;  %3186 = vmatprep.mubr.msk.bf16.mxu1 %vm3754_vm0, %v3752_v4 }
0x105b   :  { %3210 = vmatprep.mubr.msk.bf16.mxu0 %vm3754_vm0, %v3752_v4  ;;  %3190 = vmatprep.subr.bf16.mxu1 %v3752_v4 }
0x105c   :  { %3220 = vmatprep.subr.bf16.mxu0 %v3752_v4 }
0x1060   :  { %3187 = vmatmul.mubr.msk.bf16.vlgmr.msra.gmra.mrb[44].mxu1 %vm430_vm1, %v1875_v6 }
0x1061   :  { %3211 = vmatmul.mubr.msk.bf16.vlgmr.msra.gmra.mrb[28].mxu0 %vm430_vm1, %v2123_v60  ;;  %3192 = vmatprep.mubr.msk.bf16.mxu1 %vm3754_vm0, %v3752_v4 }
0x1062   :  { %3236 = vmatprep.mubr.msk.bf16.mxu0 %vm3754_vm0, %v3752_v4 }
0x112b   :  { %v4114_v19 = vpop.f32.mrb[40].mxu1 }
0x112c   :  { %v3182_v20 = vpop.f32.mrb[41].mxu1  ;;  %v2043_v22 = vpop.f32.mrb[24].mxu0 }
0x112d   :  { %v4116_v23 = vpop.f32.mrb[42].mxu1  ;;  %v3200_v24 = vpop.f32.mrb[25].mxu0  ;;  %v2044_v57 = vadd.f32 %v2043_v22, %v1997_v32 }
0x112e   :  { %v3183_v27 = vpop.f32.mrb[43].mxu1  ;;  %v2046_v28 = vpop.f32.mrb[26].mxu0 }
0x112f   :  { %v3201_v29 = vpop.f32.mrb[27].mxu0  ;;  %v2047_v47 = vadd.f32 %v2046_v28, %v1998_v43  ;;  %v2050_v48 = vsel %vm478_vm2, %v2044_v57, -inf }
0x1131   :  { %v2053_v52 = vsel %vm478_vm2, %v2047_v47, -inf }
0x1133   :  { %v1919_v18 = vpop.f32.mrb[44].mxu1 }
0x1134   :  { %v1920_v33 = vadd.f32 %v1919_v18, %v1871_v31  ;;  %v3188_v34 = vpop.f32.mrb[45].mxu1  ;;  %v2166_v35 = vpop.f32.mrb[28].mxu0 }
0x1135   :  { %v1922_v36 = vpop.f32.mrb[46].mxu1  ;;  %v3212_v37 = vpop.f32.mrb[29].mxu0  ;;  %v2167_v51 = vadd.f32 %v2166_v35, %v2120_v49 }
0x1136   :  { %v1923_v39 = vadd.f32 %v1922_v36, %v1872_v21  ;;  %v3189_v40 = vpop.f32.mrb[47].mxu1  ;;  %v2169_v41 = vpop.f32.mrb[30].mxu0  ;;  %v1926_v42 = vsel %vm478_vm2, %v1920_v33, -inf }
0x1137   :  { %v3213_v44 = vpop.f32.mrb[31].mxu0  ;;  %1927 = vmax.xlane.f32.xlu0 %v1926_v42  ;;  %v2170_v45 = vadd.f32 %v2169_v41, %v2121_v38  ;;  %v2173_v53 = vsel %vm478_vm2, %v2167_v51, -inf }
0x1138   :  { %v1929_v46 = vsel %vm478_vm2, %v1923_v39, -inf }
0x1139   :  { %1930 = vmax.xlane.f32.xlu1 %v1929_v46  ;;  %v2176_v50 = vsel %vm478_vm2, %v2170_v45, -inf }
0x113b   :  { %2051 = vmax.xlane.f32.xlu0 %v2050_v48 }
0x113d   :  { %2177 = vmax.xlane.f32.xlu1 %v2176_v50 }
0x113f   :  { %2054 = vmax.xlane.f32.xlu0 %v2053_v52  ;;  %v3403_v52 = vld [vmem:[#allocation8 + $0x40] sm:$0xff]  }
0x1140   :  { %3221 = vmatpush3.bf16.msra.mxu0 %v3403_v52  ;;  %v3422_v52 = vld [vmem:[#allocation10 + $0xb4] ss:$8 sps:$4 sm:$0xff]  }
0x1141   :  { %3222 = vmatprep.subr.bf16.mxu0 %v3752_v4 }
0x1143   :  { %2174 = vmax.xlane.f32.xlu0 %v2173_v53  ;;  %v3404_v53 = vld [vmem:[#allocation8 + $0x48] sm:$0xff]  }
0x1144   :  { %3223 = vmatpush3.bf16.msra.mxu0 %v3404_v53  ;;  %v3420_v53 = vld [vmem:[#allocation10 + $0xb0] ss:$8 sps:$4 sm:$0xff]  }
0x1145   :  { %3224 = vmatprep.subr.bf16.mxu0 %v3752_v4 }
0x11c4   :  { %v1928_v56 = vpop.xlane.xlu0 %1927 }
0x11c5   :  { %v1932_v6 = vsub.f32 %v1920_v33, %v1928_v56  ;;  %v3405_v56 = vld [vmem:[#allocation8 + $0x50] sm:$0xff]  }
0x11c6   :  { %v1931_v59 = vpop.xlane.xlu1 %1930  ;;  %3225 = vmatpush3.bf16.msra.mxu0 %v3405_v56  ;;  %v3425_v56 = vld [vmem:[#allocation10 + $0xc4] ss:$8 sps:$4 sm:$0xff]  }
0x11c7   :  { %v1933_v7 = vsub.f32 %v1923_v39, %v1931_v59  ;;  %v1934_v12 = vmul.f32 1.442695, %v1932_v6  ;;  %3226 = vmatprep.subr.bf16.mxu0 %v3752_v4  ;;  %v3406_v59 = vld [vmem:[#allocation8 + $0x58] sm:$0xff]  }
0x11c8   :  { %v2052_v61 = vpop.xlane.xlu0 %2051 }
0x11c9   :  { %v2056_v62 = vsub.f32 %v2044_v57, %v2052_v61  ;;  %v1936_v13 = vmul.f32 1.442695, %v1933_v7  ;;  %v3407_v61 = vld [vmem:[#allocation8 + $0x60] sm:$0xff]  }
0x11ca   :  { %v2178_v0 = vpop.xlane.xlu1 %2177  ;;  %3227 = vmatpush3.bf16.msra.mxu0 %v3406_v59  ;;  %v3423_v59 = vld [vmem:[#allocation10 + $0xc0] ss:$8 sps:$4 sm:$0xff]  }
0x11cb   :  { %v2058_v1 = vmul.f32 1.442695, %v2056_v62  ;;  %v2180_v2 = vsub.f32 %v2170_v45, %v2178_v0  ;;  %3228 = vmatprep.subr.bf16.mxu0 %v3752_v4  ;;  %v3408_v0 = vld [vmem:[#allocation8 + $0x68] sm:$0xff]  }
0x11cc   :  { %v2055_v3 = vpop.xlane.xlu0 %2054 }
0x11cd   :  { %3511 = vpow2.f32 %v2058_v1  ;;  %v2057_v5 = vsub.f32 %v2047_v47, %v2055_v3  ;;  %v2183_v8 = vmul.f32 1.442695, %v2180_v2 }
0x11ce   :  { %3229 = vmatpush3.bf16.msra.mxu0 %v3407_v61  ;;  %v3428_v61 = vld [vmem:[#allocation10 + $0xd4] ss:$8 sps:$4 sm:$0xff]  }
0x11cf   :  { %v2060_v9 = vmul.f32 1.442695, %v2057_v5  ;;  %3230 = vmatprep.subr.bf16.mxu0 %v3752_v4  ;;  %v3409_v5 = vld [vmem:[#allocation8 + $0x70] sm:$0xff]  }
0x11d0   :  { %v2175_v10 = vpop.xlane.xlu0 %2174 }
0x11d1   :  { %3513 = vpow2.f32 %v2060_v9  ;;  %v2179_v11 = vsub.f32 %v2167_v51, %v2175_v10 }
0x11d2   :  { %3515 = vpow2.f32 %v2183_v8  ;;  %3231 = vmatpush3.bf16.msra.mxu0 %v3408_v0  ;;  %v3410_v8 = vld [vmem:[#allocation8 + $0x78] sm:$0xff]   ;;  %v3429_v0 = vld [vmem:[#allocation10 + $0xe0] ss:$8 sps:$4 sm:$0xff]  }
0x11d3   :  { %v2181_v14 = vmul.f32 1.442695, %v2179_v11  ;;  %3232 = vmatprep.subr.bf16.mxu0 %v3752_v4 }
0x11d5   :  { %3517 = vpow2.f32 %v2181_v14 }
0x11d6   :  { %3519 = vpow2.f32 %v1934_v12  ;;  %3233 = vmatpush3.bf16.msra.mxu0 %v3409_v5 }
0x11d7   :  { %v3512_v16 = vpop.eup %3511  ;;  %3521 = vpow2.f32 %v1936_v13  ;;  %3234 = vmatprep.subr.bf16.mxu0 %v3752_v4 }
0x11d8   :  { %v2062_v17 = vsel %vm478_vm2, %v3512_v16, 0.0 }
0x11d9   :  { %2063 = vadd.xlane.f32.xlu0 %v2062_v17 }
0x11da   :  { %3235 = vmatpush3.bf16.msra.mxu0 %v3410_v8 }
0x11db   :  { %v3514_v63 = vpop.eup %3513 }
0x11dc   :  { %v2065_v15 = vsel %vm478_vm2, %v3514_v63, 0.0  ;;  %v3516_v60 = vpop.eup %3515 }
0x11dd   :  { %2066 = vadd.xlane.f32.xlu1 %v2065_v15  ;;  %v2188_v27 = vsel %vm478_vm2, %v3516_v60, 0.0 }
0x11df   :  { %v3518_v20 = vpop.eup %3517 }
0x11e0   :  { %v3520_v22 = vpop.eup %3519  ;;  %v2185_v24 = vsel %vm478_vm2, %v3518_v20, 0.0 }
0x11e1   :  { %v3522_v28 = vpop.eup %3521  ;;  %2186 = vadd.xlane.f32.xlu0 %v2185_v24  ;;  %2189 = vadd.xlane.f32.xlu1 %v2188_v27  ;;  %v1938_v29 = vsel %vm478_vm2, %v3520_v22, 0.0 }
0x11e2   :  { %v1941_v31 = vsel %vm478_vm2, %v3522_v28, 0.0 }
0x11e5   :  { %1939 = vadd.xlane.f32.xlu0 %v1938_v29  ;;  %1942 = vadd.xlane.f32.xlu1 %v1941_v31 }
0x11f6   :  { %2073 = vrot.lane.b32.xlu1 %v4077_v54, %s3741_s1 }
0x11fa   :  { %2196 = vrot.lane.b32.xlu1 %v4077_v54, %s3756_s27 }
0x11fb   :  { %1950 = vrot.lane.b32.xlu0 %v4077_v54, %s3755_s6 }
0x1266   :  { %v2064_v32 = vpop.xlane.xlu0 %2063 }
0x126a   :  { %v2067_v18 = vpop.xlane.xlu1 %2066 }
0x126e   :  { %v2187_v21 = vpop.xlane.xlu0 %2186  ;;  %v2190_v33 = vpop.xlane.xlu1 %2189 }
0x1272   :  { %v1940_v34 = vpop.xlane.xlu0 %1939  ;;  %v1943_v35 = vpop.xlane.xlu1 %1942 }
0x1273   :  { %3523 = vrcp.f32 %v1940_v34 }
0x1274   :  { %3525 = vrcp.f32 %v1943_v35  ;;  %v1456_v35 = vld [vmem:[#allocation13 + $0x1b] ss:$0 sm:$0xff] }
0x1275   :  { %3527 = vrcp.f32 %v2067_v18 }
0x1276   :  { %v1951_v36 = vpop.permute.xlu0 %1950  ;;  %3529 = vrcp.f32 %v2064_v32  ;;  %v2074_v41 = vpop.permute.xlu1 %2073 }
0x1277   :  { %3191 = vmatpush3.bf16.msra.mxu1 %v1951_v36  ;;  %3531 = vrcp.f32 %v2187_v21 }
0x1278   :  { %3202 = vmatprep.subr.bf16.mxu1 %v3752_v4  ;;  %3533 = vrcp.f32 %v2190_v33 }
0x127a   :  { %v2197_v48 = vpop.permute.xlu1 %2196 }
0x127d   :  { %v3524_v37 = vpop.eup %3523 }
0x127e   :  { %v3526_v38 = vpop.eup %3525  ;;  %v1946_v57 = vmul.f32 %v3524_v37, %v3520_v22 }
0x127f   :  { %v1947_v39 = vmul.f32 %v3526_v38, %v3522_v28  ;;  %v3528_v40 = vpop.eup %3527 }
0x1280   :  { %v3530_v42 = vpop.eup %3529  ;;  %v2071_v43 = vmul.f32 %v3528_v40, %v3514_v63  ;;  %v3411_v40 = vld [vmem:[#allocation10 + $0x80] ss:$8 sps:$4 sm:$0xff]  }
0x1281   :  { %v1948_v54 = vpack.c.bf16 %v1947_v39, %v1946_v57  ;;  %v2070_v44 = vmul.f32 %v3530_v42, %v3512_v16  ;;  %v3532_v45 = vpop.eup %3531  ;;  %v3416_v42 = vld [vmem:[#allocation10 + $0x94] ss:$8 sps:$4 sm:$0xff]  }
0x1282   :  { %v3534_v47 = vpop.eup %3533  ;;  %v2193_v49 = vmul.f32 %v3532_v45, %v3518_v20 }
0x1283   :  { %3193 = vmatmul.mubr.msk.bf16.vlgmr.msra.gmra.mrb[48].mxu1 %vm478_vm2, %v1948_v54  ;;  %v2072_v46 = vpack.c.bf16 %v2071_v43, %v2070_v44  ;;  %v2194_v50 = vmul.f32 %v3534_v47, %v3516_v60  ;;  %v3414_v43 = vld [vmem:[#allocation10 + $0x90] ss:$8 sps:$4 sm:$0xff]  }
0x1284   :  { %3203 = vmatpush3.bf16.msra.mxu1 %v2074_v41  ;;  %3204 = vmatprep.mubr.msk.bf16.mxu1 %vm3754_vm0, %v3752_v4  ;;  %v3413_v41 = vld [vmem:[#allocation10 + $0x84] ss:$8 sps:$4 sm:$0xff]  }
0x1285   :  { %3214 = vmatprep.subr.bf16.mxu1 %v3752_v4  ;;  %v2195_v51 = vpack.c.bf16 %v2194_v50, %v2193_v49  ;;  %v3419_v50 = vld [vmem:[#allocation10 + $0xa4] ss:$8 sps:$4 sm:$0xff]  }
0x128b   :  { %3205 = vmatmul.mubr.msk.bf16.vlgmr.msra.gmra.mrb[52].mxu1 %vm478_vm2, %v2072_v46 }
0x128c   :  { %3215 = vmatpush3.bf16.msra.mxu1 %v2197_v48  ;;  %3216 = vmatprep.mubr.msk.bf16.mxu1 %vm3754_vm0, %v3752_v4 }
0x128d   :  { %2519 = vmatprep.subr.bf16.mxu1 %v3413_v41 }
0x1293   :  { %3217 = vmatmul.mubr.msk.bf16.vlgmr.msra.gmra.mrb[56].mxu1 %vm478_vm2, %v2195_v51  ;;  %v3417_v51 = vld [vmem:[#allocation10 + $0xa0] ss:$8 sps:$4 sm:$0xff]  }
0x1294   :  { %2551 = vmatprep.mubr.bf16.mxu1 %v3753_v30  ;;  %2520 = vmatpush1.bf16.msra.mxu1 %v3411_v40 }
0x1295   :  { %2521 = vmatprep.subr.bf16.mxu1 %v3416_v42 }
0x1298   :  { %2522 = vmatpush1.bf16.msra.mxu1 %v3414_v43 }
0x1299   :  { %2523 = vmatprep.subr.bf16.mxu1 %v3419_v50 }
0x129c   :  { %2524 = vmatpush1.bf16.msra.mxu1 %v3417_v51 }
0x129d   :  { %2525 = vmatprep.subr.bf16.mxu1 %v3422_v52 }
0x12a0   :  { %2526 = vmatpush1.bf16.msra.mxu1 %v3420_v53 }
0x12a1   :  { %2527 = vmatprep.subr.bf16.mxu1 %v3425_v56 }
0x12a4   :  { %2528 = vmatpush1.bf16.msra.mxu1 %v3423_v59 }
0x12a5   :  { %2529 = vmatprep.subr.bf16.mxu1 %v3428_v61 }
0x1356   :  { %v1990_v62 = vpop.f32.mrb[48].mxu1 }
0x1357   :  { %v3194_v30 = vpop.f32.mrb[49].mxu1 }
0x1358   :  { %v1993_v1 = vpop.f32.mrb[50].mxu1  ;;  %v3431_v30 = vld [vmem:[#allocation10 + $0xe4] ss:$8 sps:$4 sm:$0xff]  }
0x1359   :  { %v3276_v2 = vpack.i.bf16 %v1993_v1, %v1990_v62  ;;  %v3195_v3 = vpop.f32.mrb[51].mxu1  ;;  %v3426_v62 = vld [vmem:[#allocation10 + $0xd0] ss:$8 sps:$4 sm:$0xff]   ;;  %v3434_v1 = vld [vmem:[#allocation10 + $0xf4] ss:$8 sps:$4 sm:$0xff]  }
0x135a   :  { %2530 = vmatpush1.bf16.msra.mxu1 %v3426_v62 }
0x135b   :  { %3277 = vrot.lane.b32.xlu1 %v3276_v2, %s3756_s27  ;;  %2531 = vmatprep.subr.bf16.mxu1 %v3431_v30  ;;  %v3432_v2 = vld [vmem:[#allocation10 + $0xf0] ss:$8 sps:$4 sm:$0xff]  }
0x135e   :  { %v2113_v6 = vpop.f32.mrb[52].mxu1  ;;  %2532 = vmatpush1.bf16.msra.mxu1 %v3429_v0 }
0x135f   :  { %v3206_v7 = vpop.f32.mrb[53].mxu1  ;;  %2533 = vmatprep.subr.bf16.mxu1 %v3434_v1 }
0x1360   :  { %v2116_v9 = vpop.f32.mrb[54].mxu1 }
0x1361   :  { %v3281_v10 = vpack.i.bf16 %v2116_v9, %v2113_v6  ;;  %v3207_v11 = vpop.f32.mrb[55].mxu1 }
0x1362   :  { %2534 = vmatpush1.bf16.msra.mxu1 %v3432_v2 }
0x1363   :  { %3282 = vrot.lane.b32.xlu0 %v3281_v10, %s3741_s1  ;;  %s3757_s1 = smov [#allocation14]  }
0x1364   :  { %s2794_s19 = sshll.u32 %s3757_s1, 4  ;;  %s2795_s19 = int_to_ptr.vmem [resolvable:$true] %s2794_s19 }
0x1365   :  { %s3705_s20 = scalar_lea.vmem %s2795_s19, 128  ;;  %p3710_p1 = scmp.lt.s32.totalorder %s2795_s19, %s2795_s19 }
0x1366   :  { %v2236_v12 = vpop.f32.mrb[56].mxu1  ;;  %p3706_p0 = scmp.ne.s32.totalorder %s2795_s19, %s3705_s20  ;;  %p3711_p2 = scmp.lt.s32.totalorder %s3705_s20, %s3705_s20 }
0x1367   :  { %v3218_v13 = vpop.f32.mrb[57].mxu1 }
0x1368   :  { %v2239_v14 = vpop.f32.mrb[58].mxu1  ;;  %p3712_p3 = por %p3711_p2, %p3710_p1 }
0x1369   :  { %v3286_v16 = vpack.i.bf16 %v2239_v14, %v2236_v12  ;;  %v3219_v17 = vpop.f32.mrb[59].mxu1  ;;  %v1457_v12 = vld [vmem:[#allocation13 + $0x1c] ss:$0 sm:$0xff] }
0x136a   :  { %v1458_v17 = vld [vmem:[#allocation13 + $0x1d] ss:$0 sm:$0xff]  ;;  %p3713_p4 = pnand %p3712_p3, %p3706_p0 }
0x136b   :  { %3287 = vrot.lane.b32.xlu1 %v3286_v16, %s3755_s6 }
0x13cd   :  { %v3278_v63 = vpop.permute.xlu1 %3277 }
0x13ce   :  { %v3280_v60 = vunpack.i.h.bf16 %v3278_v63  ;;  %v3279_v20 = vunpack.i.l.bf16 %v3278_v63 }
0x13d0   :  { %v2268_v27 = vsel %vm430_vm1, %v4116_v23, %v3280_v60  ;;  %v2267_v28 = vsel %vm430_vm1, %v4114_v19, %v3279_v20 }
0x13d5   :  { %v3283_v15 = vpop.permute.xlu0 %3282 }
0x13d6   :  { %v3285_v4 = vunpack.i.h.bf16 %v3283_v15  ;;  %v3284_v22 = vunpack.i.l.bf16 %v3283_v15 }
0x13d8   :  { %v2270_v32 = vsel %vm947_vm3, %v2268_v27, %v3285_v4  ;;  %v2269_v18 = vsel %vm947_vm3, %v2267_v28, %v3284_v22  ;;  %v3435_v4 = vld [vmem:[#allocation11 + $0xc0] sm:$0xff]   ;;  %v3438_v27 = vld [vmem:[#allocation11 + $0x88] sm:$0xff]   ;;  %v3439_v28 = vld [vmem:[#allocation11 + $0xd0] sm:$0xff]  }
0x13d9   :  { %v3436_v22 = vld [vmem:[#allocation11 + $0x80] sm:$0xff]   ;;  %3042 = vmatprep.subr.bf16.mxu0 %v3435_v4 }
0x13dd   :  { %v3288_v24 = vpop.permute.xlu1 %3287 }
0x13de   :  { %v3290_v29 = vunpack.i.h.bf16 %v3288_v24  ;;  %v3289_v31 = vunpack.i.l.bf16 %v3288_v24  ;;  %v3437_v24 = vld [vmem:[#allocation11 + $0xc8] sm:$0xff]  }
0x13e0   :  { %v2272_v21 = vsel %vm950_vm4, %v2270_v32, %v3290_v29  ;;  %v2271_v33 = vsel %vm950_vm4, %v2269_v18, %v3289_v31  ;;  %v3440_v29 = vld [vmem:[#allocation11 + $0x90] sm:$0xff]   ;;  %v3441_v31 = vld [vmem:[#allocation11 + $0xd8] sm:$0xff]   ;;  %v3443_v18 = vld [vmem:[#allocation11 + $0xe0] sm:$0xff]  }
0x13e1   :  { %v2273_v34 = vpack.c.bf16 %v2272_v21, %v2271_v33  ;;  %v3442_v32 = vld [vmem:[#allocation11 + $0x98] sm:$0xff]   ;;  %v3444_v21 = vld [vmem:[#allocation11 + $0xa0] sm:$0xff]   ;;  %v3445_v33 = vld [vmem:[#allocation11 + $0xe8] sm:$0xff]  }
0x13e3   :  { %3237 = vmatmul.mubr.bf16.vlgmr.msra.gmra.mrb[32].mxu0 %v2273_v34  ;;  %v3446_v34 = vld [vmem:[#allocation11 + $0xa8] sm:$0xff]  }
0x13e4   :  { %3043 = vmatpush3.bf16.msra.mxu0 %v3436_v22 }
0x13e5   :  { %3044 = vmatprep.subr.bf16.mxu0 %v3437_v24 }
0x13e8   :  { %3045 = vmatpush3.bf16.msra.mxu0 %v3438_v27 }
0x13e9   :  { %3046 = vmatprep.subr.bf16.mxu0 %v3439_v28 }
0x13ec   :  { %3047 = vmatpush3.bf16.msra.mxu0 %v3440_v29 }
0x13ed   :  { %3048 = vmatprep.subr.bf16.mxu0 %v3441_v31 }
0x13f0   :  { %3049 = vmatpush3.bf16.msra.mxu0 %v3442_v32  ;;  %v1461_v32 = vld [vmem:[#allocation13 + $0x1f] ss:$0 sm:$0xff] }
0x13f1   :  { %3050 = vmatprep.subr.bf16.mxu0 %v3443_v18 }
0x13f4   :  { %3051 = vmatpush3.bf16.msra.mxu0 %v3444_v21 }
0x13f5   :  { %3052 = vmatprep.subr.bf16.mxu0 %v3445_v33 }
0x13f8   :  { %3053 = vmatpush3.bf16.msra.mxu0 %v3446_v34 }
0x14b6   :  { %v2373_v36 = vpop.f32.mrb[32].mxu0 }
0x14b7   :  { %v2380_v37 = vadd.f32 %v2373_v36, %v4052_v25  ;;  %v3238_v23 = vpop.f32.mrb[33].mxu0  ;;  %v3448_v36 = vld [vmem:[#allocation11 + $0xb0] sm:$0xff]  }
0x14b8   :  { %v2376_v38 = vpop.f32.mrb[34].mxu0  ;;  %v3450_v23 = vld [vmem:[#allocation11 + $0xb8] sm:$0xff]  }
0x14b9   :  { %v4165_v57 = vadd.f32 %v2380_v37, %v1456_v35  ;;  %v2381_v19 = vadd.f32 %v2376_v38, %v4055_v26  ;;  %v3239_v39 = vpop.f32.mrb[35].mxu0  ;;  %v3449_v37 = vld [vmem:[#allocation11 + $0xf8] sm:$0xff]  }
0x14ba   :  { %v1460_v38 = vld [vmem:[#allocation13 + $0x1e] ss:$8 sm:$0x3] }
0x14bb   :  { %2384 = vadd.xlane.f32.xlu0 %v4165_v57  ;;  %v2383_v54 = vadd.f32 %v2381_v19, %v1456_v35  ;;  %v3447_v35 = vld [vmem:[#allocation11 + $0xf0] sm:$0xff]   ;;  %v2432_v19 = vrot.slane %v1460_v38, %v3939_v55  ;;  %v2436_v39 = vrot.slane %v1460_v38, %v3943_v58 }
0x14bc   :  { %3054 = vmatprep.subr.bf16.mxu0 %v3447_v35 }
0x14bd   :  { %2386 = vadd.xlane.f32.xlu1 %v2383_v54  ;;  %3055 = vmatpush3.bf16.msra.mxu0 %v3448_v36 }
0x14be   :  { %3056 = vmatprep.subr.bf16.mxu0 %v3449_v37 }
0x14c1   :  { %3057 = vmatpush3.bf16.msra.mxu0 %v3450_v23 }
0x1548   :  { %v2385_v25 = vpop.xlane.xlu0 %2384 }
0x1549   :  { %v2388_v44 = vmul.f32 0.0078125, %v2385_v25 }
0x154a   :  { %v2387_v45 = vpop.xlane.xlu1 %2386 }
0x154b   :  { %v2390_v46 = vsub.f32 %v4165_v57, %v2388_v44  ;;  %v2389_v47 = vmul.f32 0.0078125, %v2387_v45 }
0x154d   :  { %v2391_v26 = vsub.f32 %v2383_v54, %v2389_v47  ;;  %v2392_v48 = vmul.f32 %v2390_v46, %v2390_v46 }
0x154f   :  { %2394 = vadd.xlane.f32.xlu0 %v2392_v48  ;;  %v2393_v49 = vmul.f32 %v2391_v26, %v2391_v26 }
0x1553   :  { %2396 = vadd.xlane.f32.xlu0 %v2393_v49 }
0x15dc   :  { %v2395_v3 = vpop.xlane.xlu0 %2394 }
0x15dd   :  { %v2398_v5 = vmul.f32 0.0078125, %v2395_v3 }
0x15df   :  { %v2400_v6 = vadd.f32 1e-05, %v2398_v5 }
0x15e0   :  { %v2397_v7 = vpop.xlane.xlu0 %2396 }
0x15e1   :  { %3535 = vrsqrt.f32 %v2400_v6  ;;  %v2399_v8 = vmul.f32 0.0078125, %v2397_v7 }
0x15e3   :  { %v2401_v9 = vadd.f32 1e-05, %v2399_v8 }
0x15e5   :  { %3537 = vrsqrt.f32 %v2401_v9 }
0x15eb   :  { %v3536_v10 = vpop.eup %3535 }
0x15ec   :  { %v2404_v11 = vmul.f32 %v3536_v10, %v2390_v46 }
0x15ee   :  { %v2406_v16 = vmul.f32 %v2404_v11, %v1457_v12 }
0x15ef   :  { %v3538_v13 = vpop.eup %3537 }
0x15f0   :  { %v2405_v14 = vmul.f32 %v3538_v13, %v2391_v26  ;;  %v2408_v15 = vadd.f32 %v2406_v16, %v1458_v17 }
0x15f2   :  { %v2407_v63 = vmul.f32 %v2405_v14, %v1457_v12 }
0x15f4   :  { %v2409_v60 = vadd.f32 %v2407_v63, %v1458_v17 }
0x15f6   :  { %v2410_v20 = vpack.c.bf16 %v2409_v60, %v2408_v15 }
0x15f8   :  { %2552 = vmatmul.mubr.bf16.vlgmr.msra.gmra.mrb[60].mxu1 %v2410_v20 }
0x16cb   :  { %v2553_v54 = vpop.f32.mrb[60].mxu1 }
0x16cc   :  { %v2554_v40 = vadd.f32 %v2553_v54, %v2432_v19  ;;  %v2555_v41 = vpop.f32.mrb[61].mxu1 }
0x16cd   :  { %v2556_v42 = vadd.f32 %v2555_v41, %v2436_v39  ;;  %v2557_v43 = vpop.f32.mrb[62].mxu1 }
0x16ce   :  { %v2562_v25 = vmul.f32 %v2554_v40, %v2554_v40  ;;  %v2558_v44 = vadd.f32 %v2557_v43, %v2432_v19  ;;  %v2559_v45 = vpop.f32.mrb[63].mxu1 }
0x16cf   :  { %v2563_v46 = vmul.f32 %v2556_v42, %v2556_v42  ;;  %v2560_v47 = vadd.f32 %v2559_v45, %v2436_v39  ;;  %v2772_v39 = vld [vmem:[#allocation13 + $0x30] ss:$0 sm:$0xff] }
0x16d0   :  { %v2566_v26 = vmul.f32 %v2562_v25, %v2554_v40  ;;  %v2564_v48 = vmul.f32 %v2558_v44, %v2558_v44 }
0x16d1   :  { %v2567_v49 = vmul.f32 %v2563_v46, %v2556_v42  ;;  %v2565_v50 = vmul.f32 %v2560_v47, %v2560_v47 }
0x16d2   :  { %v2570_v51 = vmul.f32 0.044715, %v2566_v26  ;;  %v2568_v52 = vmul.f32 %v2564_v48, %v2558_v44 }
0x16d3   :  { %v2571_v53 = vmul.f32 0.044715, %v2567_v49  ;;  %v2569_v55 = vmul.f32 %v2565_v50, %v2560_v47 }
0x16d4   :  { %v2574_v56 = vadd.f32 %v2570_v51, %v2554_v40  ;;  %v2572_v58 = vmul.f32 0.044715, %v2568_v52 }
0x16d5   :  { %v2575_v59 = vadd.f32 %v2571_v53, %v2556_v42  ;;  %v2573_v61 = vmul.f32 0.044715, %v2569_v55 }
0x16d6   :  { %v2578_v62 = vmul.f32 0.7978846, %v2574_v56  ;;  %v2576_v30 = vadd.f32 %v2572_v58, %v2558_v44 }
0x16d7   :  { %v2579_v0 = vmul.f32 0.7978846, %v2575_v59  ;;  %v2577_v1 = vadd.f32 %v2573_v61, %v2560_v47 }
0x16d8   :  { %3539 = vtanh.f32 %v2578_v62  ;;  %v2580_v2 = vmul.f32 0.7978846, %v2576_v30 }
0x16d9   :  { %3541 = vtanh.f32 %v2579_v0  ;;  %v2581_v3 = vmul.f32 0.7978846, %v2577_v1 }
0x16da   :  { %3543 = vtanh.f32 %v2580_v2 }
0x16db   :  { %3545 = vtanh.f32 %v2581_v3 }
0x16e2   :  { %v3540_v5 = vpop.eup %3539 }
0x16e3   :  { %v3542_v6 = vpop.eup %3541  ;;  %v2586_v7 = vadd.f32 1.0, %v3540_v5 }
0x16e4   :  { %v3544_v8 = vpop.eup %3543  ;;  %v2587_v9 = vadd.f32 1.0, %v3542_v6 }
0x16e5   :  { %v3546_v10 = vpop.eup %3545  ;;  %v2590_v11 = vmul.f32 0.5, %v2586_v7  ;;  %v2588_v12 = vadd.f32 1.0, %v3544_v8 }
0x16e6   :  { %v2589_v13 = vadd.f32 1.0, %v3546_v10  ;;  %v2591_v14 = vmul.f32 0.5, %v2587_v9 }
0x16e7   :  { %v2592_v16 = vmul.f32 0.5, %v2588_v12  ;;  %v2594_v63 = vmul.f32 %v2590_v11, %v2554_v40  ;;  %v2773_v40 = vld [vmem:[#allocation13 + $0x31] ss:$0 sm:$0xff] }
0x16e8   :  { %v2593_v17 = vmul.f32 0.5, %v2589_v13  ;;  %v2595_v60 = vmul.f32 %v2591_v14, %v2556_v42 }
0x16e9   :  { %v2596_v15 = vmul.f32 %v2592_v16, %v2558_v44 }
0x16ea   :  { %v2597_v20 = vmul.f32 %v2593_v17, %v2560_v47 }
0x16eb   :  { %v2598_v4 = vpack.c.bf16 %v2596_v15, %v2594_v63 }
0x16ec   :  { %v2599_v22 = vpack.c.bf16 %v2597_v20, %v2595_v60 }
0x16ee   :  { %2761 = vmatprep.mubr.bf16.mxu0 %v2599_v22 }
0x16ef   :  { %2762 = vmatmul.mubr.bf16.vlgmr.msra.gmra.mrb[36].mxu0 %v2598_v4 }
0x17c2   :  { %v3058_v24 = vpop.f32.mrb[36].mxu0 }
0x17c3   :  { %v3059_v27 = vpop.f32.mrb[37].mxu0 }
0x17c4   :  { %v3060_v28 = vadd.f32 %v3059_v27, %v3058_v24  ;;  %v3061_v29 = vpop.f32.mrb[38].mxu0 }
0x17c5   :  { %v3062_v31 = vpop.f32.mrb[39].mxu0 }
0x17c6   :  { %v2769_v18 = vadd.f32 %v3060_v28, %v4165_v57 }
0x17c8   :  { %v2770_v21 = vadd.f32 %v2769_v18, %v1461_v32 }
0x17ca   :  { %2774 = vadd.xlane.f32.xlu0 %v2770_v21 }
0x1857   :  { %v2775_v33 = vpop.xlane.xlu0 %2774 }
0x1858   :  { %v2776_v34 = vmul.f32 0.0078125, %v2775_v33 }
0x185a   :  { %v2777_v35 = vsub.f32 %v2770_v21, %v2776_v34 }
0x185c   :  { %v2778_v36 = vmul.f32 %v2777_v35, %v2777_v35 }
0x185e   :  { %2779 = vadd.xlane.f32.xlu1 %v2778_v36 }
0x18eb   :  { %v2780_v37 = vpop.xlane.xlu1 %2779 }
0x18ec   :  { %v2781_v23 = vmul.f32 0.0078125, %v2780_v37 }
0x18ee   :  { %v2782_v38 = vadd.f32 1e-05, %v2781_v23 }
0x18f0   :  { %3547 = vrsqrt.f32 %v2782_v38 }
0x18fa   :  { %v3548_v19 = vpop.eup %3547 }
0x18fb   :  { %v2784_v54 = vmul.f32 %v3548_v19, %v2777_v35 }
0x18fd   :  { %v2785_v41 = vmul.f32 %v2784_v54, %v2772_v39 }
0x18ff   :  { %v2786_v42 = vadd.f32 %v2785_v41, %v2773_v40 }
0x1901   :  { %2787 = vst [vmem:[#allocation14] sm:$0xff] %v2786_v42 }
0x1902   :  { %3716 = shalt.err (!%p3713_p4)
}
0x1903   :  { %s3717_s23 = scalar_lea.hbm %s4192_s7, 128 }
0x1904   :  { %p3718_p5 = scmp.ne.s32.totalorder %s4192_s7, %s3717_s23  ;;  %p3721_p6 = scmp.lt.u32.totalorder %s3717_s23, %s4192_s7 }
0x1906   :  { %p3723_p7 = pnand %p3721_p6, %p3718_p5 }
0x1908   :  { %3726 = shalt.err (!%p3723_p7)
}
0x1909   :  { %2797 = dma.vmem_to_hbm [thread:$0]  %s2795_s19, 128, %s4192_s7, [#allocation4]  }
0x190a   :  { %3735 = dma.done.wait [#allocation4], 128  }
0x190b   :  { %3736 = vsyncadd [#allocation4], 4294967168 }
0x190c   :  { %2801 = vsyncpa [#allocation3], 1 }
0x190d   :  { %2802 = vsyncpa [#allocation6], 1 }
0x190e   :  { %2803 = vsyncpa [#allocation9], 1 }
0x190f   :  { %2804 = vsyncpa [#allocation12], 1 }
0x1910   :  { %2805 = vsyncpa [#allocation4], 1 }

</bundles_post_ra>
